<compile_context>
chip_gen: v5e
topology: v5e:2x2
jax: 0.10.0
libtpu: 0.0.40
codegen_flags: <defaults>
</compile_context>

<pallas_src>
import functools

import jax
import jax.numpy as jnp
from jax import lax
from jax.experimental import pallas as pl
from jax.experimental.pallas import tpu as pltpu


def _round_up(n, m):
    return ((n + m - 1) // m) * m


def _default_elementwise_dtype():
    """bf16 elementwise on chips with a bf16 VPU path (v6e/v7x), else f32."""
    try:
        kind = jax.devices()[0].device_kind.lower()
    except Exception:
        return jnp.float32
    for old in ("v2", "v3", "v4", "v5"):
        if old in kind:
            return jnp.float32
    return jnp.bfloat16


# --------------------------------------------------------------------------
# Pallas kernel: whole forward pass for one batch tile.
# x arrives batch-major (bt, D); after the first matmul the batch lives on
# the 128-wide lane axis and everything downstream is lane-dense.
# --------------------------------------------------------------------------
def _critic_kernel(x_ref, w1_ref, b1_ref, wva1_ref, bva1_ref,
                   wv2_ref, bv2_ref, wa2_ref, ba2_ref, out_ref):
    hh = wv2_ref.shape[0]
    ew = b1_ref.dtype  # elementwise dtype (bf16 on v6e/v7x, f32 on v5e)

    # shared_layers: Linear -> ReLU (-> Dropout, identity at eval).
    # (H, D) x (bt, D) contracted on D -> (H, bt); batch lands on lanes and
    # the x relayout is handled on-chip.
    x_bf = x_ref[...].astype(jnp.bfloat16)
    hT = lax.dot_general(w1_ref[...], x_bf,
                         dimension_numbers=(((1,), (1,)), ((), ())),
                         preferred_element_type=jnp.float32)      # (H, bt)
    hT = jnp.maximum(hT.astype(ew) + b1_ref[...], 0).astype(jnp.bfloat16)

    # value + advantage first layers fused into one (2*Hh, H) MXU matmul.
    hvaT = jnp.dot(wva1_ref[...], hT,
                   preferred_element_type=jnp.float32)            # (2Hh, bt)
    hvaT = jnp.maximum(hvaT.astype(ew) + bva1_ref[...], 0)
    hvT = hvaT[:hh, :]
    haT = hvaT[hh:, :]

    # width-1 heads: VPU multiply + XLU sublane reduce (f32 accumulation);
    # an N=1 MXU matmul would waste 255/256 output columns.
    v = jnp.sum((hvT * wv2_ref[...]).astype(jnp.float32),
                axis=0, keepdims=True) + bv2_ref[...]             # (1, bt)
    a = jnp.sum((haT * wa2_ref[...]).astype(jnp.float32),
                axis=0, keepdims=True) + ba2_ref[...]             # (1, bt)

    # dueling combine: mean over the (size-1) output-feature axis.
    a_mean = jnp.mean(a, axis=0, keepdims=True)
    q = v + a - a_mean                                            # (1, bt)

    out_ref[...] = q[None].astype(out_ref.dtype)                  # (1, 1, bt)


# --------------------------------------------------------------------------
# Wrapper: one (or a few) large batch tiles; weights broadcast to every step.
# No host-side transpose/cast/pad of x.
# --------------------------------------------------------------------------
@functools.partial(jax.jit, static_argnames=("batch_tile",))
def optimized_critic_forward(x, params, *, batch_tile=1024):
    w1, b1, wva1, bva1, wv2, bv2, wa2, ba2 = params
    B, D = x.shape
    H = w1.shape[0]          # hidden_dims[0]
    Hh2 = wva1.shape[0]      # 2 * (hidden_dims[-1] // 2)
    Hh = Hh2 // 2

    # Batch tile: a single full-batch tile when it fits (no per-step overhead);
    # otherwise 128-aligned tiles of size `batch_tile` with a Pallas partial
    # edge block for the remainder (padded lanes are garbage but independent,
    # and sliced off below).
    bt_cap = max(128, _round_up(batch_tile, 128))
    bt = B if B <= bt_cap else bt_cap
    n_tiles = pl.cdiv(B, bt)

    full = lambda i: (0, 0)  # constant-index weight/bias blocks

    grid_spec = pltpu.PrefetchScalarGridSpec(
        num_scalar_prefetch=0,
        grid=(n_tiles,),
        in_specs=[
            pl.BlockSpec((bt, D), lambda i: (i, 0)),                    # x tile
            pl.BlockSpec((H, D), full), pl.BlockSpec((H, 1), full),     # W1, b1
            pl.BlockSpec((Hh2, H), full), pl.BlockSpec((Hh2, 1), full), # Wva1, bva1
            pl.BlockSpec((Hh, 1), full), pl.BlockSpec((1, 1), full),    # Wv2, bv2
            pl.BlockSpec((Hh, 1), full), pl.BlockSpec((1, 1), full),    # Wa2, ba2
        ],
        out_specs=pl.BlockSpec((1, 1, bt), lambda i: (i, 0, 0)),
    )

    out = pl.pallas_call(
        _critic_kernel,
        out_shape=jax.ShapeDtypeStruct((n_tiles, 1, bt), x.dtype),
        grid_spec=grid_spec,
        compiler_params=pltpu.CompilerParams(
            dimension_semantics=("parallel",)),
    )(x, w1, b1, wva1, bva1, wv2, bv2, wa2, ba2)

    # lane-dense (n_tiles, 1, bt) -> (B, 1); drops any edge-block padding.
    return out.reshape(n_tiles * bt, 1)[:B]


# --------------------------------------------------------------------------
# Deterministic parameter init (mirrors nn.init.orthogonal_ gain=1, bias=0)
# --------------------------------------------------------------------------
def _orthogonal(key, out_dim, in_dim):
    """Returns a (out_dim, in_dim) orthogonal matrix (PyTorch weight layout)."""
    n, m = max(out_dim, in_dim), min(out_dim, in_dim)
    a = jax.random.normal(key, (n, m), dtype=jnp.float32)
    q, r = jnp.linalg.qr(a)
    q = q * jnp.sign(jnp.diagonal(r))[None, :]
    if out_dim < in_dim:
        q = q.T
    return q  # (out_dim, in_dim)


def init_params(key, input_dim, hidden_dims=(256, 256), *, elementwise_dtype=None):
    """Builds packed params for the dueling critic (kernel layout)."""
    # TODO(synk): only the default 2-entry hidden_dims (one shared layer) is
    #             supported; deeper shared stacks would need more matmuls.
    assert len(hidden_dims) == 2
    if elementwise_dtype is None:
        elementwise_dtype = _default_elementwise_dtype()
    h = hidden_dims[0]
    hh = hidden_dims[-1] // 2
    ks = jax.random.split(key, 5)
    # MXU operands stored in bf16 (f32 accumulation in-kernel); elementwise
    # operands in the chip's preferred elementwise dtype; final biases f32.
    w1 = _orthogonal(ks[0], h, input_dim).astype(jnp.bfloat16)          # (H, D)
    b1 = jnp.zeros((h, 1), elementwise_dtype)
    wv1 = _orthogonal(ks[1], hh, h)
    wa1 = _orthogonal(ks[3], hh, h)
    wva1 = jnp.concatenate([wv1, wa1], axis=0).astype(jnp.bfloat16)     # (2Hh, H)
    bva1 = jnp.zeros((2 * hh, 1), elementwise_dtype)
    wv2 = _orthogonal(ks[2], 1, hh).T.astype(elementwise_dtype)         # (Hh, 1)
    bv2 = jnp.zeros((1, 1), jnp.float32)
    wa2 = _orthogonal(ks[4], 1, hh).T.astype(elementwise_dtype)         # (Hh, 1)
    ba2 = jnp.zeros((1, 1), jnp.float32)
    return (w1, b1, wva1, bva1, wv2, bv2, wa2, ba2)


# --------------------------------------------------------------------------
# Pure-JAX reference (same math, f32, no Pallas) for a sanity check
# --------------------------------------------------------------------------
def _reference(x, params):
    w1, b1, wva1, bva1, wv2, bv2, wa2, ba2 = params
    f32 = jnp.float32
    w1 = w1.astype(f32)
    wva1 = wva1.astype(f32)
    b1 = b1.astype(f32)
    bva1 = bva1.astype(f32)
    wv2 = wv2.astype(f32)
    wa2 = wa2.astype(f32)
    hh = wv2.shape[0]
    h = jnp.maximum(x @ w1.T + b1.T, 0.0)
    hva = jnp.maximum(h @ wva1.T + bva1.T, 0.0)
    hv, ha = hva[:, :hh], hva[:, hh:]
    v = hv @ wv2 + bv2
    a = ha @ wa2 + ba2
    return v + a - jnp.mean(a, axis=-1, keepdims=True)


if __name__ == "__main__":
    key = jax.random.PRNGKey(0)
    k_x, k_x2, k_p = jax.random.split(key, 3)

    INPUT_DIM = 32
    HIDDEN_DIMS = (256, 256)
    params = init_params(k_p, INPUT_DIM, HIDDEN_DIMS)

    # Small batch: single full-batch tile, no padding anywhere.
    B = 8
    x = jax.random.normal(k_x, (B, INPUT_DIM), dtype=jnp.float32)
    q = jax.block_until_ready(optimized_critic_forward(x, params))
    q_ref = _reference(x, params)
    assert q.shape == (B, 1)
    assert jnp.allclose(q, q_ref, atol=5e-2, rtol=5e-2)

    # Default path (single tile) and forced multi-tile path with a partial
    # Pallas edge block (B=200 with batch_tile=128 -> tiles of 128 + 72).
    B2 = 200
    x2 = jax.random.normal(k_x2, (B2, INPUT_DIM), dtype=jnp.float32)
    q2 = jax.block_until_ready(optimized_critic_forward(x2, params))
    q2_small = jax.block_until_ready(
        optimized_critic_forward(x2, params, batch_tile=128))
    q2_ref = _reference(x2, params)
    assert q2.shape == (B2, 1) and q2_small.shape == (B2, 1)
    assert jnp.allclose(q2, q2_ref, atol=5e-2, rtol=5e-2)
    assert jnp.allclose(q2_small, q2_ref, atol=5e-2, rtol=5e-2)

    print("KERNEL_OK")
</pallas_src>

<mosaic_0001>
module attributes {stable_mosaic.version = 11 : i64} {
  func.func @_critic_kernel(%arg0: i32, %arg1: memref<8x32xf32, #tpu.memory_space<vmem>>, %arg2: memref<256x32xbf16, #tpu.memory_space<vmem>>, %arg3: memref<256x1xbf16, #tpu.memory_space<vmem>>, %arg4: memref<256x256xbf16, #tpu.memory_space<vmem>>, %arg5: memref<256x1xbf16, #tpu.memory_space<vmem>>, %arg6: memref<128x1xbf16, #tpu.memory_space<vmem>>, %arg7: memref<1x1xf32, #tpu.memory_space<vmem>>, %arg8: memref<128x1xbf16, #tpu.memory_space<vmem>>, %arg9: memref<1x1xf32, #tpu.memory_space<vmem>>, %arg10: memref<1x1x8xf32, #tpu.memory_space<vmem>>) attributes {dimension_semantics = [#tpu.dimension_semantics<parallel>], iteration_bounds = array<i64: 1>, scalar_prefetch = 0 : i64, scratch_operands = 0 : i64, tpu.core_type = #tpu.core_type<tc>, window_params = [{transform_indices = @transform_0, window_bounds = array<i64: 8, 32>}, {pipeline_mode = #tpu.pipeline_mode<synchronous>, transform_indices = @transform_1, window_bounds = array<i64: 256, 32>}, {pipeline_mode = #tpu.pipeline_mode<synchronous>, transform_indices = @transform_2, window_bounds = array<i64: 256, 1>}, {pipeline_mode = #tpu.pipeline_mode<synchronous>, transform_indices = @transform_3, window_bounds = array<i64: 256, 256>}, {pipeline_mode = #tpu.pipeline_mode<synchronous>, transform_indices = @transform_4, window_bounds = array<i64: 256, 1>}, {pipeline_mode = #tpu.pipeline_mode<synchronous>, transform_indices = @transform_5, window_bounds = array<i64: 128, 1>}, {pipeline_mode = #tpu.pipeline_mode<synchronous>, transform_indices = @transform_6, window_bounds = array<i64: 1, 1>}, {pipeline_mode = #tpu.pipeline_mode<synchronous>, transform_indices = @transform_7, window_bounds = array<i64: 128, 1>}, {pipeline_mode = #tpu.pipeline_mode<synchronous>, transform_indices = @transform_8, window_bounds = array<i64: 1, 1>}, {transform_indices = @transform_9, window_bounds = array<i64: 1, 1, 8>}]} {
    %c0 = arith.constant 0 : index
    %c0_0 = arith.constant 0 : index
    %0 = vector.load %arg1[%c0, %c0_0] : memref<8x32xf32, #tpu.memory_space<vmem>>, vector<8x32xf32>
    %1 = arith.truncf %0 : vector<8x32xf32> to vector<8x32xbf16>
    %c0_1 = arith.constant 0 : index
    %c0_2 = arith.constant 0 : index
    %2 = vector.load %arg2[%c0_1, %c0_2] : memref<256x32xbf16, #tpu.memory_space<vmem>>, vector<256x32xbf16>
    %cst = arith.constant dense<0.000000e+00> : vector<256x8xf32>
    %3 = tpu.matmul %2, %1, %cst {dimension_numbers = #tpu.dot_dimension_numbers<[1], [1], [0], [0], [0, 0, 1, 0], [], []>} : vector<256x32xbf16>, vector<8x32xbf16>, vector<256x8xf32> -> vector<256x8xf32>
    %4 = arith.truncf %3 : vector<256x8xf32> to vector<256x8xbf16>
    %c0_3 = arith.constant 0 : index
    %c0_4 = arith.constant 0 : index
    %5 = vector.load %arg3[%c0_3, %c0_4] : memref<256x1xbf16, #tpu.memory_space<vmem>>, vector<256x1xbf16>
    %6 = vector.broadcast %5 : vector<256x1xbf16> to vector<256x8xbf16>
    %7 = arith.addf %4, %6 : vector<256x8xbf16>
    %cst_5 = arith.constant 0.000000e+00 : bf16
    %8 = vector.broadcast %cst_5 : bf16 to vector<256x8xbf16>
    %9 = arith.maximumf %7, %8 : vector<256x8xbf16>
    %c0_6 = arith.constant 0 : index
    %c0_7 = arith.constant 0 : index
    %10 = vector.load %arg4[%c0_6, %c0_7] : memref<256x256xbf16, #tpu.memory_space<vmem>>, vector<256x256xbf16>
    %cst_8 = arith.constant dense<0.000000e+00> : vector<256x8xf32>
    %11 = tpu.matmul %10, %9, %cst_8 {dimension_numbers = #tpu.dot_dimension_numbers<[1], [0], [0], [1], [0, 0, 1, 1], [], []>} : vector<256x256xbf16>, vector<256x8xbf16>, vector<256x8xf32> -> vector<256x8xf32>
    %12 = arith.truncf %11 : vector<256x8xf32> to vector<256x8xbf16>
    %c0_9 = arith.constant 0 : index
    %c0_10 = arith.constant 0 : index
    %13 = vector.load %arg5[%c0_9, %c0_10] : memref<256x1xbf16, #tpu.memory_space<vmem>>, vector<256x1xbf16>
    %14 = vector.broadcast %13 : vector<256x1xbf16> to vector<256x8xbf16>
    %15 = arith.addf %12, %14 : vector<256x8xbf16>
    %cst_11 = arith.constant 0.000000e+00 : bf16
    %16 = vector.broadcast %cst_11 : bf16 to vector<256x8xbf16>
    %17 = arith.maximumf %15, %16 : vector<256x8xbf16>
    %18 = vector.extract_strided_slice %17 {offsets = [0, 0], sizes = [128, 8], strides = [1, 1]} : vector<256x8xbf16> to vector<128x8xbf16>
    %19 = vector.extract_strided_slice %17 {offsets = [128, 0], sizes = [128, 8], strides = [1, 1]} : vector<256x8xbf16> to vector<128x8xbf16>
    %c0_12 = arith.constant 0 : index
    %c0_13 = arith.constant 0 : index
    %20 = vector.load %arg6[%c0_12, %c0_13] : memref<128x1xbf16, #tpu.memory_space<vmem>>, vector<128x1xbf16>
    %21 = vector.broadcast %20 : vector<128x1xbf16> to vector<128x8xbf16>
    %22 = arith.mulf %18, %21 : vector<128x8xbf16>
    %23 = arith.extf %22 : vector<128x8xbf16> to vector<128x8xf32>
    %cst_14 = arith.constant dense<0.000000e+00> : vector<8xf32>
    %24 = vector.multi_reduction <add>, %23, %cst_14 [0] : vector<128x8xf32> to vector<8xf32>
    %25 = vector.shape_cast %24 : vector<8xf32> to vector<1x8xf32>
    %c0_15 = arith.constant 0 : index
    %c0_16 = arith.constant 0 : index
    %26 = vector.load %arg7[%c0_15, %c0_16] : memref<1x1xf32, #tpu.memory_space<vmem>>, vector<1x1xf32>
    %27 = vector.broadcast %26 : vector<1x1xf32> to vector<1x8xf32>
    %28 = arith.addf %25, %27 : vector<1x8xf32>
    %c0_17 = arith.constant 0 : index
    %c0_18 = arith.constant 0 : index
    %29 = vector.load %arg8[%c0_17, %c0_18] : memref<128x1xbf16, #tpu.memory_space<vmem>>, vector<128x1xbf16>
    %30 = vector.broadcast %29 : vector<128x1xbf16> to vector<128x8xbf16>
    %31 = arith.mulf %19, %30 : vector<128x8xbf16>
    %32 = arith.extf %31 : vector<128x8xbf16> to vector<128x8xf32>
    %cst_19 = arith.constant dense<0.000000e+00> : vector<8xf32>
    %33 = vector.multi_reduction <add>, %32, %cst_19 [0] : vector<128x8xf32> to vector<8xf32>
    %34 = vector.shape_cast %33 : vector<8xf32> to vector<1x8xf32>
    %c0_20 = arith.constant 0 : index
    %c0_21 = arith.constant 0 : index
    %35 = vector.load %arg9[%c0_20, %c0_21] : memref<1x1xf32, #tpu.memory_space<vmem>>, vector<1x1xf32>
    %36 = vector.broadcast %35 : vector<1x1xf32> to vector<1x8xf32>
    %37 = arith.addf %34, %36 : vector<1x8xf32>
    %cst_22 = arith.constant dense<0.000000e+00> : vector<8xf32>
    %38 = vector.multi_reduction <add>, %37, %cst_22 [0] : vector<1x8xf32> to vector<8xf32>
    %39 = vector.shape_cast %38 : vector<8xf32> to vector<1x8xf32>
    %cst_23 = arith.constant 1.000000e+00 : f32
    %40 = vector.broadcast %cst_23 : f32 to vector<1x8xf32>
    %41 = arith.divf %39, %40 : vector<1x8xf32>
    %42 = arith.addf %28, %37 : vector<1x8xf32>
    %43 = arith.subf %42, %41 : vector<1x8xf32>
    %44 = vector.shape_cast %43 : vector<1x8xf32> to vector<1x1x8xf32>
    %c0_24 = arith.constant 0 : index
    %c0_25 = arith.constant 0 : index
    %c0_26 = arith.constant 0 : index
    %45 = vector.load %arg10[%c0_24, %c0_25, %c0_26] : memref<1x1x8xf32, #tpu.memory_space<vmem>>, vector<1x1x8xf32>
    tpu.vector_store %arg10[%c0_24, %c0_25, %c0_26], %44 {strides = array<i32>} : memref<1x1x8xf32, #tpu.memory_space<vmem>>, vector<1x1x8xf32>,
    return
  }
  func.func @transform_0(%arg0: i32) -> (i32, i32) {
    %c0_i32 = arith.constant 0 : i32
    %c0_i32_0 = arith.constant 0 : i32
    return %arg0, %c0_i32 : i32, i32
  }
  func.func @transform_1(%arg0: i32) -> (i32, i32) {
    %c0_i32 = arith.constant 0 : i32
    %c0_i32_0 = arith.constant 0 : i32
    %c0_i32_1 = arith.constant 0 : i32
    return %c0_i32, %c0_i32_0 : i32, i32
  }
  func.func @transform_2(%arg0: i32) -> (i32, i32) {
    %c0_i32 = arith.constant 0 : i32
    %c0_i32_0 = arith.constant 0 : i32
    %c0_i32_1 = arith.constant 0 : i32
    return %c0_i32, %c0_i32_0 : i32, i32
  }
  func.func @transform_3(%arg0: i32) -> (i32, i32) {
    %c0_i32 = arith.constant 0 : i32
    %c0_i32_0 = arith.constant 0 : i32
    %c0_i32_1 = arith.constant 0 : i32
    return %c0_i32, %c0_i32_0 : i32, i32
  }
  func.func @transform_4(%arg0: i32) -> (i32, i32) {
    %c0_i32 = arith.constant 0 : i32
    %c0_i32_0 = arith.constant 0 : i32
    %c0_i32_1 = arith.constant 0 : i32
    return %c0_i32, %c0_i32_0 : i32, i32
  }
  func.func @transform_5(%arg0: i32) -> (i32, i32) {
    %c0_i32 = arith.constant 0 : i32
    %c0_i32_0 = arith.constant 0 : i32
    %c0_i32_1 = arith.constant 0 : i32
    return %c0_i32, %c0_i32_0 : i32, i32
  }
  func.func @transform_6(%arg0: i32) -> (i32, i32) {
    %c0_i32 = arith.constant 0 : i32
    %c0_i32_0 = arith.constant 0 : i32
    %c0_i32_1 = arith.constant 0 : i32
    return %c0_i32, %c0_i32_0 : i32, i32
  }
  func.func @transform_7(%arg0: i32) -> (i32, i32) {
    %c0_i32 = arith.constant 0 : i32
    %c0_i32_0 = arith.constant 0 : i32
    %c0_i32_1 = arith.constant 0 : i32
    return %c0_i32, %c0_i32_0 : i32, i32
  }
  func.func @transform_8(%arg0: i32) -> (i32, i32) {
    %c0_i32 = arith.constant 0 : i32
    %c0_i32_0 = arith.constant 0 : i32
    %c0_i32_1 = arith.constant 0 : i32
    return %c0_i32, %c0_i32_0 : i32, i32
  }
  func.func @transform_9(%arg0: i32) -> (i32, i32, i32) {
    %c0_i32 = arith.constant 0 : i32
    %c0_i32_0 = arith.constant 0 : i32
    %c0_i32_1 = arith.constant 0 : i32
    return %arg0, %c0_i32, %c0_i32_0 : i32, i32, i32
  }
}

</mosaic_0001>

<bundles_post_ra>
// kernel: optimized_critic_forward.1
= control target key start
LH: loop header
LB: loop body
LE: loop exit
PB: predicated region body
PF: predicated region fallthrough
CT: control target
= control target key end

     0   :  { %s3776_s0 = inlined_call_operand.vmem [shape: f32[8,32], index: 0, kind: input, shape index: {}]   ;;  %s3777_s1 = inlined_call_operand.vmem [shape: bf16[256,32], index: 1, kind: input, shape index: {}]   ;;  %s3778_s2 = inlined_call_operand.vmem [shape: bf16[256,1], index: 2, kind: input, shape index: {}]   ;;  %s3779_s3 = inlined_call_operand.vmem [shape: bf16[256,256], index: 3, kind: input, shape index: {}]   ;;  %s3780_s4 = inlined_call_operand.vmem [shape: bf16[256,1], index: 4, kind: input, shape index: {}]   ;;  %s3781_s5 = inlined_call_operand.vmem [shape: bf16[128,1], index: 5, kind: input, shape index: {}]   ;;  %s3782_s6 = inlined_call_operand.<no memory space> [shape: f32[1,1], index: 6, kind: input, shape index: {}]   ;;  %s3783_s7 = inlined_call_operand.vmem [shape: bf16[128,1], index: 7, kind: input, shape index: {}]   ;;  %s3784_s9 = inlined_call_operand.hbm [shape: f32[1,1,8], index: 9, kind: output, shape index: {}]   ;;  %s3785_s8 = inlined_call_operand.<no memory space> [shape: f32[1,1], index: 8, kind: input, shape index: {}]  }
   0x1   :  { %v14_v0 = vstv %s3782_s6  ;;  %v16_v1 = vstv %s3785_s8 }
   0x2   :  { %15 = vst [vmem:[#allocation2] sm:$0x1] %v14_v0 }
   0x3   :  { %17 = vst [vmem:[#allocation3] sm:$0x1] %v16_v1 }
   0x4   :  { %v329_v2 = vld [vmem:[%s3778_s2 + $0x10] sm:$0xf]  ;;  %v327_v3 = vld [vmem:[%s3778_s2 + $0x8] sm:$0xf]  ;;  %v38_v4 = vld [vmem:[%s3776_s0] sm:$0xff]  ;;  %v2680_v5 = vmov 0  }
   0x5   :  { %2653 = vset.pattern.permute.xlu2 %v2680_v5  ;;  %2652 = vset.pattern.permute.xlu1 %v2680_v5  ;;  %v325_v6 = vld [vmem:[%s3778_s2] sm:$0xf]  ;;  %v39_v7 = vpack.c.bf16 %v38_v4, %v38_v4  ;;  %vm152_vm0 = vcmask 261120  }
   0x6   :  { %2651 = vset.pattern.permute.xlu0 %v2680_v5  ;;  %395 = vperm.xlu2 %2653, %v329_v2  }
   0x7   :  { %377 = vperm.xlu1 %2652, %v327_v3   ;;  %359 = vperm.xlu0 %2651, %v325_v6   ;;  %v202_v8 = vsel %vm152_vm0, %v39_v7, 0 }
   0x8   :  { %211 = vmatpush.bf16.xpose.msra.mxu0 %v202_v8  ;;  %2631 = vmatpush.bf16.xpose.msra.mxu3 %v202_v8 }
   0x9   :  { %18 = vsyncpa [#allocation5], 0  ;;  %v330_v9 = vld [vmem:[%s3778_s2 + $0x14] sm:$0xf]  ;;  %v328_v10 = vld [vmem:[%s3778_s2 + $0xc] sm:$0xf] }
   0xa   :  { %v326_v11 = vld [vmem:[%s3778_s2 + $0x4] sm:$0xf]  ;;  %v333_v13 = vld [vmem:[%s3778_s2 + $0x20] sm:$0xf]  ;;  %v332_v14 = vld [vmem:[%s3778_s2 + $0x1c] sm:$0xf] }
   0xb   :  { %v2583_v12 = vld [vmem:[%s3777_s1] sm:$0xff]  ;;  %v331_v15 = vld [vmem:[%s3778_s2 + $0x18] sm:$0xf]  ;;  %v336_v16 = vld [vmem:[%s3778_s2 + $0x2c] sm:$0xf]  ;;  %vm2031_vm1 = vcmask 64512  }
   0xc   :  { %v335_v17 = vld [vmem:[%s3778_s2 + $0x28] sm:$0xf]  ;;  %v334_v18 = vld [vmem:[%s3778_s2 + $0x24] sm:$0xf]  ;;  %v339_v20 = vld [vmem:[%s3778_s2 + $0x38] sm:$0xf] }
   0xd   :  { %v2584_v19 = vld [vmem:[%s3777_s1 + $0x8] sm:$0xff]  ;;  %v338_v21 = vld [vmem:[%s3778_s2 + $0x34] sm:$0xf]  ;;  %v337_v22 = vld [vmem:[%s3778_s2 + $0x30] sm:$0xf]  ;;  %s2366_s21 = sshll.u32 %s3784_s9, 4  ;;  %s2367_s21 = int_to_ptr.hbm [resolvable:$true] %s2366_s21 }
   0xe   :  { %404 = vperm.xlu2 %2653, %v330_v9   ;;  %v342_v23 = vld [vmem:[%s3778_s2 + $0x44] sm:$0xf]  ;;  %v341_v24 = vld [vmem:[%s3778_s2 + $0x40] sm:$0xf]  ;;  %v340_v25 = vld [vmem:[%s3778_s2 + $0x3c] sm:$0xf] }
   0xf   :  { %386 = vperm.xlu1 %2652, %v328_v10   ;;  %368 = vperm.xlu0 %2651, %v326_v11   ;;  %v2585_v26 = vld [vmem:[%s3777_s1 + $0x10] sm:$0xff]  ;;  %v2596_v27 = vld [vmem:[%s3777_s1 + $0x68] sm:$0xff]  ;;  %v356_v31 = vld [vmem:[%s3778_s2 + $0x7c] sm:$0xf]  ;;  %v2681_v1 = vmov 839922192  }
  0x10   :  { %2439 = vmatmul.msk.bf16.vlgmr.msra.gmra.mxu0 %vm152_vm0, %v2583_v12  ;;  %2452 = vmatmul.msk.bf16.vlgmr.msra.gmra.mxu3 %vm152_vm0, %v2596_v27  ;;  %v345_v28 = vld [vmem:[%s3778_s2 + $0x50] sm:$0xf]  ;;  %v344_v29 = vld [vmem:[%s3778_s2 + $0x4c] sm:$0xf]  ;;  %v343_v30 = vld [vmem:[%s3778_s2 + $0x48] sm:$0xf]  ;;  %v363_v2 = vunpack.c.l.s4 %v2681_v1 }
  0x11   :  { %v355_v32 = vld [vmem:[%s3778_s2 + $0x78] sm:$0xf]  ;;  %v346_v33 = vld [vmem:[%s3778_s2 + $0x54] sm:$0xf]  ;;  %v351_v35 = vld [vmem:[%s3778_s2 + $0x68] sm:$0xf] }
  0x12   :  { %v2586_v34 = vld [vmem:[%s3777_s1 + $0x18] sm:$0xff]  ;;  %v2597_v36 = vld [vmem:[%s3777_s1 + $0x70] sm:$0xff]  ;;  %v350_v39 = vld [vmem:[%s3778_s2 + $0x64] sm:$0xf]  ;;  %v2940_v6 = vunpack.c.0.s8 %v363_v2  ;;  %vm2357_vm2 = vcmask 57344  }
  0x13   :  { %v354_v37 = vld [vmem:[%s3778_s2 + $0x74] sm:$0xf]  ;;  %v353_v38 = vld [vmem:[%s3778_s2 + $0x70] sm:$0xf]  ;;  %v349_v40 = vld [vmem:[%s3778_s2 + $0x60] sm:$0xf] }
  0x14   :  { %v352_v41 = vld [vmem:[%s3778_s2 + $0x6c] sm:$0xf]  ;;  %v2587_v42 = vld [vmem:[%s3777_s1 + $0x20] sm:$0xff]  ;;  %v2598_v44 = vld [vmem:[%s3777_s1 + $0x78] sm:$0xff] }
  0x15   :  { %v1255_v43 = vld [vmem:[%s3780_s4] sm:$0xf]  ;;  %v348_v45 = vld [vmem:[%s3778_s2 + $0x5c] sm:$0xf]  ;;  %v347_v46 = vld [vmem:[%s3778_s2 + $0x58] sm:$0xf] }
  0x16   :  { %431 = vperm.xlu2 %2653, %v333_v13   ;;  %v1258_v47 = vld [vmem:[%s3780_s4 + $0xc] sm:$0xf]  ;;  %v1257_v48 = vld [vmem:[%s3780_s4 + $0x8] sm:$0xf]  ;;  %v1256_v49 = vld [vmem:[%s3780_s4 + $0x4] sm:$0xf] }
  0x17   :  { %422 = vperm.xlu1 %2652, %v332_v14   ;;  %413 = vperm.xlu0 %2651, %v331_v15   ;;  %v2588_v50 = vld [vmem:[%s3777_s1 + $0x28] sm:$0xff]  ;;  %v1261_v51 = vld [vmem:[%s3780_s4 + $0x18] sm:$0xf]  ;;  %v1260_v52 = vld [vmem:[%s3780_s4 + $0x14] sm:$0xf] }
  0x18   :  { %v1259_v53 = vld [vmem:[%s3780_s4 + $0x10] sm:$0xf]  ;;  %v1264_v54 = vld [vmem:[%s3780_s4 + $0x24] sm:$0xf]  ;;  %v1263_v55 = vld [vmem:[%s3780_s4 + $0x20] sm:$0xf] }
  0x19   :  { %v1262_v56 = vld [vmem:[%s3780_s4 + $0x1c] sm:$0xf]  ;;  %v2589_v57 = vld [vmem:[%s3777_s1 + $0x30] sm:$0xff]  ;;  %v1266_v59 = vld [vmem:[%s3780_s4 + $0x2c] sm:$0xf] }
  0x1a   :  { %v1267_v58 = vld [vmem:[%s3780_s4 + $0x30] sm:$0xf]  ;;  %v1265_v60 = vld [vmem:[%s3780_s4 + $0x28] sm:$0xf]  ;;  %v1270_v61 = vld [vmem:[%s3780_s4 + $0x3c] sm:$0xf] }
  0x1b   :  { %v1269_v62 = vld [vmem:[%s3780_s4 + $0x38] sm:$0xf]  ;;  %v1268_v63 = vld [vmem:[%s3780_s4 + $0x34] sm:$0xf]  ;;  %v1273_v3 = vld [vmem:[%s3780_s4 + $0x48] sm:$0xf] }
  0x1c   :  { %v2590_v0 = vld [vmem:[%s3777_s1 + $0x38] sm:$0xff]  ;;  %v1272_v4 = vld [vmem:[%s3780_s4 + $0x44] sm:$0xf]  ;;  %v1271_v5 = vld [vmem:[%s3780_s4 + $0x40] sm:$0xf] }
  0x1d   :  { %v1276_v9 = vld [vmem:[%s3780_s4 + $0x54] sm:$0xf]  ;;  %v1275_v10 = vld [vmem:[%s3780_s4 + $0x50] sm:$0xf]  ;;  %v1274_v11 = vld [vmem:[%s3780_s4 + $0x4c] sm:$0xf] }
  0x1e   :  { %458 = vperm.xlu2 %2653, %v336_v16   ;;  %v2591_v12 = vld [vmem:[%s3777_s1 + $0x40] sm:$0xff] }
  0x1f   :  { %449 = vperm.xlu1 %2652, %v335_v17   ;;  %440 = vperm.xlu0 %2651, %v334_v18  }
  0x20   :  { %2440 = vmatmul.msk.bf16.gmra.mxu0 %vm152_vm0, %v2584_v19  ;;  %2453 = vmatmul.msk.bf16.gmra.mxu3 %vm152_vm0, %v2597_v36  ;;  %v1280_v36 = vld [vmem:[%s3780_s4 + $0x64] sm:$0xf] }
  0x26   :  { %485 = vperm.xlu2 %2653, %v339_v20  }
  0x27   :  { %476 = vperm.xlu1 %2652, %v338_v21   ;;  %467 = vperm.xlu0 %2651, %v337_v22   ;;  %v1279_v22 = vld [vmem:[%s3780_s4 + $0x60] sm:$0xf] }
  0x2e   :  { %512 = vperm.xlu2 %2653, %v342_v23   ;;  %v1278_v23 = vld [vmem:[%s3780_s4 + $0x5c] sm:$0xf] }
  0x2f   :  { %503 = vperm.xlu1 %2652, %v341_v24   ;;  %494 = vperm.xlu0 %2651, %v340_v25   ;;  %v1277_v24 = vld [vmem:[%s3780_s4 + $0x58] sm:$0xf] }
  0x30   :  { %2441 = vmatmul.msk.bf16.gmra.mxu0 %vm152_vm0, %v2585_v26  ;;  %2454 = vmatmul.msk.bf16.gmra.mxu3 %vm152_vm0, %v2598_v44 }
  0x36   :  { %539 = vperm.xlu2 %2653, %v345_v28  }
  0x37   :  { %530 = vperm.xlu1 %2652, %v344_v29   ;;  %521 = vperm.xlu0 %2651, %v343_v30  }
  0x3e   :  { %638 = vperm.xlu2 %2653, %v356_v31  }
  0x3f   :  { %629 = vperm.xlu1 %2652, %v355_v32   ;;  %548 = vperm.xlu0 %2651, %v346_v33   ;;  %v1282_v33 = vld [vmem:[%s3780_s4 + $0x6c] sm:$0xf] }
  0x40   :  { %2442 = vmatmul.msk.bf16.gmra.mxu0 %vm152_vm0, %v2586_v34  ;;  %v1281_v34 = vld [vmem:[%s3780_s4 + $0x68] sm:$0xf] }
  0x46   :  { %593 = vperm.xlu2 %2653, %v351_v35  }
  0x47   :  { %620 = vperm.xlu1 %2652, %v354_v37   ;;  %611 = vperm.xlu0 %2651, %v353_v38   ;;  %v2592_v37 = vld [vmem:[%s3777_s1 + $0x48] sm:$0xff] }
  0x4e   :  { %584 = vperm.xlu2 %2653, %v350_v39  }
  0x4f   :  { %575 = vperm.xlu1 %2652, %v349_v40   ;;  %602 = vperm.xlu0 %2651, %v352_v41  }
  0x50   :  { %2443 = vmatmul.msk.bf16.gmra.mxu0 %vm152_vm0, %v2587_v42 }
  0x56   :  { %1289 = vperm.xlu2 %2653, %v1255_v43  }
  0x57   :  { %566 = vperm.xlu1 %2652, %v348_v45   ;;  %557 = vperm.xlu0 %2651, %v347_v46  }
  0x5e   :  { %1316 = vperm.xlu2 %2653, %v1258_v47  }
  0x5f   :  { %1307 = vperm.xlu1 %2652, %v1257_v48   ;;  %1298 = vperm.xlu0 %2651, %v1256_v49   ;;  %v1285_v48 = vld [vmem:[%s3780_s4 + $0x78] sm:$0xf]  ;;  %v1284_v49 = vld [vmem:[%s3780_s4 + $0x74] sm:$0xf] }
  0x60   :  { %2444 = vmatmul.msk.bf16.gmra.mxu0 %vm152_vm0, %v2588_v50  ;;  %v396_v18 = vpop.permute.xlu2 %395  ;;  %v1283_v50 = vld [vmem:[%s3780_s4 + $0x70] sm:$0xf] }
  0x66   :  { %1343 = vperm.xlu2 %2653, %v1261_v51  }
  0x67   :  { %1334 = vperm.xlu1 %2652, %v1260_v52   ;;  %1325 = vperm.xlu0 %2651, %v1259_v53  }
  0x68   :  { %v405_v32 = vpop.permute.xlu2 %404 }
  0x6e   :  { %1370 = vperm.xlu2 %2653, %v1264_v54  }
  0x6f   :  { %1361 = vperm.xlu1 %2652, %v1263_v55   ;;  %1352 = vperm.xlu0 %2651, %v1262_v56  }
  0x70   :  { %2445 = vmatmul.msk.bf16.gmra.mxu0 %vm152_vm0, %v2589_v57  ;;  %v2996_v51 = vpop.permute.xlu2 %431  ;;  %v401_v57 = vperm.slane %v396_v18, %v2940_v6 }
  0x76   :  { %1397 = vperm.xlu2 %2653, %v1267_v58  }
  0x77   :  { %1388 = vperm.xlu1 %2652, %v1266_v59   ;;  %1379 = vperm.xlu0 %2651, %v1265_v60   ;;  %v1800_v60 = vld [vmem:[%s3781_s5 + $0x4] sm:$0xf] }
  0x79   :  { %v360_v7 = vpop.permute.xlu0 %359  ;;  %v378_v13 = vpop.permute.xlu1 %377 }
  0x7a   :  { %v365_v8 = vperm.slane %v360_v7, %v2940_v6  ;;  %v383_v30 = vperm.slane %v378_v13, %v2940_v6  ;;  %v3017_v7 = vpop.permute.xlu2 %458  ;;  %v1802_v13 = vld [vmem:[%s3781_s5 + $0xc] sm:$0xf] }
  0x7c   :  { %v677_v15 = vunpack.c.l.bf16 %v365_v8  ;;  %v679_v41 = vunpack.c.l.bf16 %v383_v30 }
  0x7e   :  { %1424 = vperm.xlu2 %2653, %v1270_v61   ;;  %v1799_v61 = vld [vmem:[%s3781_s5] sm:$0xf] }
  0x7f   :  { %1415 = vperm.xlu1 %2652, %v1269_v62   ;;  %1406 = vperm.xlu0 %2651, %v1268_v63   ;;  %v1286_v62 = vld [vmem:[%s3780_s4 + $0x7c] sm:$0xf]  ;;  %v2593_v63 = vld [vmem:[%s3777_s1 + $0x50] sm:$0xff] }
  0x80   :  { %2446 = vmatmul.msk.bf16.gmra.mxu0 %vm152_vm0, %v2590_v0 }
  0x81   :  { %v369_v19 = vpop.permute.xlu0 %368  ;;  %v387_v28 = vpop.permute.xlu1 %386 }
  0x82   :  { %v374_v20 = vperm.slane %v369_v19, %v2940_v6  ;;  %v392_v46 = vperm.slane %v387_v28, %v2940_v6  ;;  %v2594_v28 = vld [vmem:[%s3777_s1 + $0x58] sm:$0xff] }
  0x84   :  { %v678_v26 = vunpack.c.l.bf16 %v374_v20  ;;  %v680_v53 = vunpack.c.l.bf16 %v392_v46  ;;  %v3034_v20 = vpop.permute.xlu2 %485  ;;  %v1807_v46 = vld [vmem:[%s3781_s5 + $0x20] sm:$0xf] }
  0x86   :  { %1451 = vperm.xlu2 %2653, %v1273_v3   ;;  %v681_v3 = vunpack.c.l.bf16 %v401_v57  ;;  %v1811_v57 = vld [vmem:[%s3781_s5 + $0x30] sm:$0xf] }
  0x87   :  { %1442 = vperm.xlu1 %2652, %v1272_v4   ;;  %1433 = vperm.xlu0 %2651, %v1271_v5  }
  0x89   :  { %v2973_v35 = vpop.permute.xlu0 %413  ;;  %v2984_v45 = vpop.permute.xlu1 %422 }
  0x8d   :  { %v213_v14 = vpop.f32.mrf.mxu0 }
  0x8e   :  { %v293_v16 = vpack.c.bf16 %v213_v14, %v213_v14  ;;  %1478 = vperm.xlu2 %2653, %v1276_v9   ;;  %v1801_v14 = vld [vmem:[%s3781_s5 + $0x8] sm:$0xf] }
  0x8f   :  { %1469 = vperm.xlu1 %2652, %v1275_v10   ;;  %1460 = vperm.xlu0 %2651, %v1274_v11   ;;  %v410_v10 = vperm.slane %v405_v32, %v2940_v6 }
  0x90   :  { %v645_v17 = vunpack.c.l.bf16 %v293_v16  ;;  %2447 = vmatmul.msk.bf16.gmra.mxu0 %vm152_vm0, %v2591_v12  ;;  %v1803_v12 = vld [vmem:[%s3781_s5 + $0x10] sm:$0xf] }
  0x91   :  { %v2998_v54 = vpop.permute.xlu0 %440  ;;  %v3001_v59 = vpop.permute.xlu1 %449 }
  0x92   :  { %v709_v21 = vadd.f32 %v677_v15, %v645_v17  ;;  %v682_v17 = vunpack.c.l.bf16 %v410_v10 }
  0x94   :  { %v805_v38 = vmax.f32 %v709_v21, 0.0  ;;  %v419_v21 = vperm.slane %v2973_v35, %v2940_v6 }
  0x95   :  { %v215_v25 = vpop.f32.mrf.mxu0 }
  0x96   :  { %v294_v27 = vpack.c.bf16 %v215_v25, %v215_v25  ;;  %1505 = vperm.xlu2 %2653, %v1279_v22   ;;  %v1806_v25 = vld [vmem:[%s3781_s5 + $0x1c] sm:$0xf]  ;;  %v683_v32 = vunpack.c.l.bf16 %v419_v21 }
  0x97   :  { %1496 = vperm.xlu1 %2652, %v1278_v23   ;;  %1487 = vperm.xlu0 %2651, %v1277_v24   ;;  %v3040_v24 = vpop.f32.mrf.mxu3 }
  0x98   :  { %v646_v29 = vunpack.c.l.bf16 %v294_v27  ;;  %v1804_v27 = vld [vmem:[%s3781_s5 + $0x14] sm:$0xf] }
  0x99   :  { %v3019_v8 = vpop.permute.xlu0 %467  ;;  %v3032_v15 = vpop.permute.xlu1 %476 }
  0x9a   :  { %v710_v31 = vadd.f32 %v678_v26, %v646_v29  ;;  %v1805_v26 = vld [vmem:[%s3781_s5 + $0x18] sm:$0xf] }
  0x9c   :  { %v806_v39 = vmax.f32 %v710_v31, 0.0 }
  0x9d   :  { %v218_v40 = vpop.f32.mrf.mxu0 }
  0x9e   :  { %v295_v42 = vpack.c.bf16 %v218_v40, %v218_v40  ;;  %1532 = vperm.xlu2 %2653, %v1282_v33   ;;  %v2981_v43 = vpack.c.bf16 %v806_v39, %v805_v38  ;;  %v3063_v40 = vpop.permute.xlu2 %512 }
  0x9f   :  { %1523 = vperm.xlu1 %2652, %v1281_v34   ;;  %1514 = vperm.xlu0 %2651, %v1280_v36   ;;  %v3061_v39 = vpop.f32.mrf.mxu3 }
  0xa0   :  { %v647_v44 = vunpack.c.l.bf16 %v295_v42  ;;  %2448 = vmatmul.msk.bf16.gmra.mxu0 %vm152_vm0, %v2592_v37  ;;  %v428_v37 = vperm.slane %v2984_v45, %v2940_v6 }
  0xa1   :  { %v3038_v22 = vpop.permute.xlu0 %494  ;;  %v3056_v35 = vpop.permute.xlu1 %503 }
  0xa2   :  { %v711_v47 = vadd.f32 %v679_v41, %v647_v44  ;;  %v1809_v41 = vld [vmem:[%s3781_s5 + $0x28] sm:$0xf]  ;;  %v1808_v44 = vld [vmem:[%s3781_s5 + $0x24] sm:$0xf] }
  0xa4   :  { %v807_v0 = vmax.f32 %v711_v47, 0.0  ;;  %v684_v47 = vunpack.c.l.bf16 %v428_v37 }
  0xa5   :  { %v220_v52 = vpop.f32.mrf.mxu0 }
  0xa6   :  { %v296_v55 = vpack.c.bf16 %v220_v52, %v220_v52  ;;  %1559 = vperm.xlu2 %2653, %v1285_v48   ;;  %v437_v52 = vperm.slane %v2996_v51, %v2940_v6 }
  0xa7   :  { %1550 = vperm.xlu1 %2652, %v1284_v49   ;;  %1541 = vperm.xlu0 %2651, %v1283_v50  }
  0xa8   :  { %v648_v56 = vunpack.c.l.bf16 %v296_v55  ;;  %v3080_v55 = vpop.f32.mrf.mxu3 }
  0xa9   :  { %v3068_v42 = vpop.permute.xlu0 %521  ;;  %v3076_v50 = vpop.permute.xlu1 %530 }
  0xaa   :  { %v712_v58 = vadd.f32 %v680_v53, %v648_v56  ;;  %v1812_v56 = vld [vmem:[%s3781_s5 + $0x34] sm:$0xf] }
  0xac   :  { %v808_v1 = vmax.f32 %v712_v58, 0.0  ;;  %v1810_v58 = vld [vmem:[%s3781_s5 + $0x2c] sm:$0xf] }
  0xad   :  { %v223_v2 = vpop.f32.mrf.mxu0 }
  0xae   :  { %v297_v4 = vpack.c.bf16 %v223_v2, %v223_v2  ;;  %1826 = vperm.xlu2 %2653, %v1800_v60   ;;  %v3015_v5 = vpack.c.bf16 %v808_v1, %v807_v0  ;;  %v2595_v60 = vld [vmem:[%s3777_s1 + $0x60] sm:$0xff]  ;;  %v685_v0 = vunpack.c.l.bf16 %v437_v52  ;;  %v455_v52 = vperm.slane %v3001_v59, %v2940_v6  ;;  %v2082_v59 = vld [vmem:[%s3783_s7 + $0x14] sm:$0xf] }
  0xaf   :  { %1817 = vperm.xlu1 %2652, %v1799_v61   ;;  %1568 = vperm.xlu0 %2651, %v1286_v62   ;;  %v3094_v62 = vpop.permute.xlu2 %539 }
  0xb0   :  { %v649_v9 = vunpack.c.l.bf16 %v297_v4  ;;  %2449 = vmatmul.msk.bf16.gmra.mxu0 %vm152_vm0, %v2593_v63 }
  0xb1   :  { %v3096_v1 = vpop.permute.xlu0 %548 }
  0xb2   :  { %v713_v11 = vadd.f32 %v681_v3, %v649_v9  ;;  %v446_v9 = vperm.slane %v2998_v54, %v2940_v6 }
  0xb4   :  { %v809_v29 = vmax.f32 %v713_v11, 0.0  ;;  %v285_v11 = vpop.f32.mrf.mxu3 }
  0xb5   :  { %v225_v16 = vpop.f32.mrf.mxu0 }
  0xb6   :  { %v298_v18 = vpack.c.bf16 %v225_v16, %v225_v16  ;;  %1853 = vperm.xlu2 %2653, %v1803_v12   ;;  %v630_v12 = vpop.permute.xlu1 %629  ;;  %v1813_v16 = vld [vmem:[%s3781_s5 + $0x38] sm:$0xf] }
  0xb7   :  { %1844 = vperm.xlu1 %2652, %v1802_v13   ;;  %1835 = vperm.xlu0 %2651, %v1801_v14   ;;  %v2069_v13 = vld [vmem:[#allocation2] sm:$0x1]  ;;  %v1814_v14 = vld [vmem:[%s3781_s5 + $0x3c] sm:$0xf]  ;;  %v639_v21 = vpop.permute.xlu2 %638 }
  0xb8   :  { %v650_v19 = vunpack.c.l.bf16 %v298_v18  ;;  %v686_v18 = vunpack.c.l.bf16 %v446_v9  ;;  %v2081_v9 = vld [vmem:[%s3783_s7 + $0x10] sm:$0xf] }
  0xb9   :  { %v612_v54 = vpop.permute.xlu0 %611 }
  0xba   :  { %v714_v23 = vadd.f32 %v682_v17, %v650_v19 }
  0xbc   :  { %v810_v30 = vmax.f32 %v714_v23, 0.0 }
  0xbd   :  { %v228_v31 = vpop.f32.mrf.mxu0 }
  0xbe   :  { %v299_v33 = vpack.c.bf16 %v228_v31, %v228_v31  ;;  %1880 = vperm.xlu2 %2653, %v1806_v25   ;;  %v3054_v34 = vpack.c.bf16 %v810_v30, %v809_v29  ;;  %v2078_v29 = vld [vmem:[%s3783_s7 + $0x4] sm:$0xf]  ;;  %v2077_v30 = vld [vmem:[%s3783_s7] sm:$0xf] }
  0xbf   :  { %1871 = vperm.xlu1 %2652, %v1805_v26   ;;  %1862 = vperm.xlu0 %2651, %v1804_v27   ;;  %v288_v26 = vpop.f32.mrf.mxu3  ;;  %v635_v27 = vperm.slane %v630_v12, %v2940_v6 }
  0xc0   :  { %v651_v36 = vunpack.c.l.bf16 %v299_v33  ;;  %2450 = vmatmul.msk.bf16.gmra.mxu0 %vm152_vm0, %v2594_v28  ;;  %v2079_v28 = vld [vmem:[%s3783_s7 + $0x8] sm:$0xf]  ;;  %v323_v31 = vpack.c.bf16 %v288_v26, %v288_v26 }
  0xc2   :  { %v715_v38 = vadd.f32 %v683_v32, %v651_v36  ;;  %v621_v36 = vpop.permute.xlu1 %620 }
  0xc4   :  { %v811_v51 = vmax.f32 %v715_v38, 0.0  ;;  %v644_v38 = vperm.slane %v639_v21, %v2940_v6 }
  0xc5   :  { %v230_v45 = vpop.f32.mrf.mxu0 }
  0xc6   :  { %v300_v48 = vpack.c.bf16 %v230_v45, %v230_v45  ;;  %1907 = vperm.xlu2 %2653, %v1809_v41   ;;  %v626_v41 = vperm.slane %v621_v36, %v2940_v6  ;;  %v617_v45 = vperm.slane %v612_v54, %v2940_v6 }
  0xc7   :  { %1898 = vperm.xlu1 %2652, %v1808_v44   ;;  %1889 = vperm.xlu0 %2651, %v1807_v46   ;;  %v707_v46 = vunpack.c.l.bf16 %v635_v27 }
  0xc8   :  { %v652_v49 = vunpack.c.l.bf16 %v300_v48  ;;  %v322_v48 = vpack.c.bf16 %v285_v11, %v285_v11 }
  0xca   :  { %v716_v53 = vadd.f32 %v684_v47, %v652_v49  ;;  %v321_v47 = vpack.c.bf16 %v3080_v55, %v3080_v55  ;;  %v675_v49 = vunpack.c.l.bf16 %v323_v31  ;;  %v319_v55 = vpack.c.bf16 %v3040_v24, %v3040_v24 }
  0xcb   :  { %v674_v12 = vunpack.c.l.bf16 %v322_v48 }
  0xcc   :  { %v812_v61 = vmax.f32 %v716_v53, 0.0  ;;  %v594_v53 = vpop.permute.xlu2 %593  ;;  %v673_v11 = vunpack.c.l.bf16 %v321_v47  ;;  %v739_v24 = vadd.f32 %v707_v46, %v675_v49  ;;  %v671_v54 = vunpack.c.l.bf16 %v319_v55  ;;  %v2083_v46 = vld [vmem:[%s3783_s7 + $0x18] sm:$0xf] }
  0xcd   :  { %v233_v63 = vpop.f32.mrf.mxu0 }
  0xce   :  { %v301_v2 = vpack.c.bf16 %v233_v63, %v233_v63  ;;  %1934 = vperm.xlu2 %2653, %v1812_v56   ;;  %v3098_v3 = vpack.c.bf16 %v812_v61, %v811_v51  ;;  %v706_v51 = vunpack.c.l.bf16 %v626_v41  ;;  %v603_v61 = vpop.permute.xlu0 %602  ;;  %v290_v63 = vpop.f32.mrf.mxu3  ;;  %v2084_v41 = vld [vmem:[%s3783_s7 + $0x1c] sm:$0xf] }
  0xcf   :  { %1925 = vperm.xlu1 %2652, %v1811_v57   ;;  %1916 = vperm.xlu0 %2651, %v1810_v58   ;;  %v464_v57 = vperm.slane %v3017_v7, %v2940_v6  ;;  %v708_v58 = vunpack.c.l.bf16 %v644_v38  ;;  %v705_v7 = vunpack.c.l.bf16 %v617_v45 }
  0xd0   :  { %v653_v4 = vunpack.c.l.bf16 %v301_v2  ;;  %2451 = vmatmul.msk.bf16.gmra.mxu0 %vm152_vm0, %v2595_v60  ;;  %v599_v60 = vperm.slane %v594_v53, %v2940_v6  ;;  %v320_v2 = vpack.c.bf16 %v3061_v39, %v3061_v39 }
  0xd1   :  { %v737_v27 = vadd.f32 %v705_v7, %v673_v11 }
  0xd2   :  { %v717_v10 = vadd.f32 %v685_v0, %v653_v4  ;;  %v608_v0 = vperm.slane %v603_v61, %v2940_v6  ;;  %v324_v4 = vpack.c.bf16 %v290_v63, %v290_v63  ;;  %v482_v61 = vperm.slane %v3032_v15, %v2940_v6 }
  0xd3   :  { %v833_v45 = vmax.f32 %v737_v27, 0.0 }
  0xd4   :  { %v813_v32 = vmax.f32 %v717_v10, 0.0  ;;  %v2080_v10 = vld [vmem:[%s3783_s7 + $0xc] sm:$0xf]  ;;  %v704_v21 = vunpack.c.l.bf16 %v608_v0  ;;  %v690_v15 = vunpack.c.l.bf16 %v482_v61 }
  0xd5   :  { %v235_v17 = vpop.f32.mrf.mxu0  ;;  %v2088_v0 = vld [vmem:[%s3783_s7 + $0x2c] sm:$0xf] }
  0xd6   :  { %v302_v19 = vpack.c.bf16 %v235_v17, %v235_v17  ;;  %2072 = vperm.xlu2 %2653, %v2069_v13   ;;  %v687_v13 = vunpack.c.l.bf16 %v455_v52  ;;  %v688_v17 = vunpack.c.l.bf16 %v464_v57  ;;  %v473_v57 = vperm.slane %v3019_v8, %v2940_v6  ;;  %v2087_v8 = vld [vmem:[%s3783_s7 + $0x28] sm:$0xf] }
  0xd7   :  { %1952 = vperm.xlu1 %2652, %v1814_v14   ;;  %1943 = vperm.xlu0 %2651, %v1813_v16   ;;  %v676_v16 = vunpack.c.l.bf16 %v324_v4 }
  0xd8   :  { %v654_v23 = vunpack.c.l.bf16 %v302_v19  ;;  %v689_v55 = vunpack.c.l.bf16 %v473_v57 }
  0xda   :  { %v718_v25 = vadd.f32 %v686_v18, %v654_v23  ;;  %v703_v18 = vunpack.c.l.bf16 %v599_v60  ;;  %v672_v23 = vunpack.c.l.bf16 %v320_v2 }
  0xdc   :  { %v814_v33 = vmax.f32 %v718_v25, 0.0  ;;  %v740_v25 = vadd.f32 %v708_v58, %v676_v16  ;;  %v736_v38 = vadd.f32 %v704_v21, %v672_v23  ;;  %v500_v21 = vperm.slane %v3038_v22, %v2940_v6 }
  0xdd   :  { %v238_v37 = vpop.f32.mrf.mxu0 }
  0xde   :  { %2113 = vperm.xlu2 %2653, %v2079_v28   ;;  %v3121_v44 = vpack.c.bf16 %v814_v33, %v813_v32  ;;  %v303_v56 = vpack.c.bf16 %v238_v37, %v238_v37  ;;  %v738_v28 = vadd.f32 %v706_v51, %v674_v12  ;;  %v836_v31 = vmax.f32 %v740_v25, 0.0  ;;  %v2085_v33 = vld [vmem:[%s3783_s7 + $0x20] sm:$0xf]  ;;  %v2091_v12 = vld [vmem:[%s3783_s7 + $0x38] sm:$0xf] }
  0xdf   :  { %2104 = vperm.xlu1 %2652, %v2078_v29   ;;  %2095 = vperm.xlu0 %2651, %v2077_v30   ;;  %v835_v29 = vmax.f32 %v739_v24, 0.0  ;;  %v735_v37 = vadd.f32 %v703_v18, %v671_v54  ;;  %v832_v51 = vmax.f32 %v736_v38, 0.0  ;;  %v2090_v24 = vld [vmem:[%s3783_s7 + $0x34] sm:$0xf]  ;;  %v491_v18 = vperm.slane %v3034_v20, %v2940_v6  ;;  %v2346_v25 = vld [vmem:[#allocation3] sm:$0x1] }
  0xe0   :  { %v655_v14 = vunpack.c.l.bf16 %v303_v56  ;;  %v834_v47 = vmax.f32 %v738_v28, 0.0  ;;  %v692_v28 = vunpack.c.l.bf16 %v500_v21  ;;  %v509_v20 = vperm.slane %v3056_v35, %v2940_v6 }
  0xe1   :  { %v3148_v36 = vpack.c.bf16 %v836_v31, %v835_v29  ;;  %v831_v60 = vmax.f32 %v735_v37, 0.0  ;;  %v691_v54 = vunpack.c.l.bf16 %v491_v18 }
  0xe2   :  { %v719_v30 = vadd.f32 %v687_v13, %v655_v14  ;;  %v3157_v53 = vpack.c.bf16 %v834_v47, %v833_v45  ;;  %v2089_v13 = vld [vmem:[%s3783_s7 + $0x30] sm:$0xf] }
  0xe3   :  { %1134 = vmatpush.bf16.msra.mxu2 %v3148_v36  ;;  %v3166_v63 = vpack.c.bf16 %v832_v51, %v831_v60  ;;  %v527_v60 = vperm.slane %v3068_v42, %v2940_v6  ;;  %v536_v42 = vperm.slane %v3076_v50, %v2940_v6  ;;  %v2624_v50 = vld [vmem:[%s3779_s3 + $0xc4] sm:$0xf0] }
  0xe4   :  { %v815_v49 = vmax.f32 %v719_v30, 0.0 }
  0xe5   :  { %v240_v39 = vpop.f32.mrf.mxu0 }
  0xe6   :  { %v304_v19 = vpack.c.bf16 %v240_v39, %v240_v39  ;;  %2140 = vperm.xlu2 %2653, %v2082_v59   ;;  %v2086_v59 = vld [vmem:[%s3783_s7 + $0x24] sm:$0xf] }
  0xe7   :  { %2131 = vperm.xlu1 %2652, %v2081_v9   ;;  %2122 = vperm.xlu0 %2651, %v2080_v10  }
  0xe8   :  { %v656_v26 = vunpack.c.l.bf16 %v304_v19  ;;  %1135 = vmatpush.bf16.msra.mxu2 %v3157_v53 }
  0xea   :  { %v720_v32 = vadd.f32 %v688_v17, %v656_v26  ;;  %v2092_v26 = vld [vmem:[%s3783_s7 + $0x3c] sm:$0xf] }
  0xec   :  { %v816_v52 = vmax.f32 %v720_v32, 0.0  ;;  %1136 = vmatpush.bf16.msra.mxu2 %v3166_v63 }
  0xed   :  { %v243_v48 = vpop.f32.mrf.mxu0 }
  0xee   :  { %2167 = vperm.xlu2 %2653, %v2085_v33   ;;  %v3159_v56 = vpack.c.bf16 %v816_v52, %v815_v49  ;;  %v305_v58 = vpack.c.bf16 %v243_v48, %v243_v48  ;;  %v518_v48 = vperm.slane %v3063_v40, %v2940_v6 }
  0xef   :  { %2158 = vperm.xlu1 %2652, %v2084_v41   ;;  %2149 = vperm.xlu0 %2651, %v2083_v46   ;;  %v693_v46 = vunpack.c.l.bf16 %v509_v20 }
  0xf0   :  { %v657_v2 = vunpack.c.l.bf16 %v305_v58  ;;  %v694_v57 = vunpack.c.l.bf16 %v518_v48 }
  0xf2   :  { %v721_v9 = vadd.f32 %v689_v55, %v657_v2  ;;  %v695_v2 = vunpack.c.l.bf16 %v527_v60 }
  0xf4   :  { %v817_v14 = vmax.f32 %v721_v9, 0.0 }
  0xf5   :  { %v245_v4 = vpop.f32.mrf.mxu0 }
  0xf6   :  { %v306_v7 = vpack.c.bf16 %v245_v4, %v245_v4  ;;  %2194 = vperm.xlu2 %2653, %v2088_v0   ;;  %v696_v4 = vunpack.c.l.bf16 %v536_v42 }
  0xf7   :  { %2185 = vperm.xlu1 %2652, %v2087_v8   ;;  %2176 = vperm.xlu0 %2651, %v2086_v59  }
  0xf8   :  { %v658_v10 = vunpack.c.l.bf16 %v306_v7 }
  0xfa   :  { %v722_v11 = vadd.f32 %v690_v15, %v658_v10 }
  0xfc   :  { %v818_v39 = vmax.f32 %v722_v11, 0.0 }
  0xfd   :  { %v248_v16 = vpop.f32.mrf.mxu0 }
  0xfe   :  { %2221 = vperm.xlu2 %2653, %v2091_v12   ;;  %v843_v17 = vpack.c.bf16 %v818_v39, %v817_v14  ;;  %v307_v19 = vpack.c.bf16 %v248_v16, %v248_v16 }
  0xff   :  { %2212 = vperm.xlu1 %2652, %v2090_v24   ;;  %2203 = vperm.xlu0 %2651, %v2089_v13   ;;  %v545_v24 = vperm.slane %v3094_v62, %v2940_v6  ;;  %v554_v13 = vperm.slane %v3096_v1, %v2940_v6  ;;  %v2626_v62 = vld [vmem:[%s3779_s3 + $0xd4] sm:$0xf0]  ;;  %v558_v1 = vpop.permute.xlu0 %557 }
 0x100   :  { %v659_v23 = vunpack.c.l.bf16 %v307_v19  ;;  %v2561_v19 = vld [vmem:[%s3779_s3 + $0xd0] sm:$0xf] }
 0x102   :  { %v723_v30 = vadd.f32 %v691_v54, %v659_v23  ;;  %v2562_v54 = vor.u32 %v2626_v62, %v2561_v19 }
 0x104   :  { %v819_v33 = vmax.f32 %v723_v30, 0.0 }
 0x105   :  { %v250_v27 = vpop.f32.mrf.mxu0 }
 0x106   :  { %v308_v29 = vpack.c.bf16 %v250_v27, %v250_v27  ;;  %v576_v27 = vpop.permute.xlu1 %575 }
 0x107   :  { %2349 = vperm.xlu1 %2652, %v2346_v25   ;;  %2230 = vperm.xlu0 %2651, %v2092_v26   ;;  %v581_v48 = vperm.slane %v576_v27, %v2940_v6 }
 0x108   :  { %v660_v31 = vunpack.c.l.bf16 %v308_v29  ;;  %v3241_v29 = vpop.permute.xlu0 %1298 }
 0x10a   :  { %v724_v32 = vadd.f32 %v692_v28, %v660_v31  ;;  %v2569_v31 = vld [vmem:[%s3779_s3 + $0xe0] sm:$0xf] }
 0x10c   :  { %v820_v22 = vmax.f32 %v724_v32, 0.0  ;;  %v2628_v32 = vld [vmem:[%s3779_s3 + $0xe4] sm:$0xf0] }
 0x10d   :  { %v253_v37 = vpop.f32.mrf.mxu0  ;;  %v2570_v20 = vor.u32 %v2628_v32, %v2569_v31 }
 0x10e   :  { %v309_v38 = vpack.c.bf16 %v253_v37, %v253_v37  ;;  %v844_v41 = vpack.c.bf16 %v820_v22, %v819_v33  ;;  %v567_v33 = vpop.permute.xlu1 %566 }
 0x110   :  { %v661_v45 = vunpack.c.l.bf16 %v309_v38  ;;  %1045 = vmatpush.bf16.msra.mxu1 %v844_v41  ;;  %2632 = vmatpush.bf16.msrb.mxu3 %v844_v41  ;;  %v3251_v38 = vpop.permute.xlu0 %1325  ;;  %v2457_v41 = vld [vmem:[%s3779_s3] sm:$0xf] }
 0x112   :  { %v725_v47 = vadd.f32 %v693_v46, %v661_v45  ;;  %v2600_v46 = vld [vmem:[%s3779_s3 + $0x4] sm:$0xf0] }
 0x114   :  { %1046 = vmatpush.bf16.msra.mxu1 %v843_v17  ;;  %2633 = vmatpush.bf16.msrb.mxu3 %v843_v17  ;;  %v821_v51 = vmax.f32 %v725_v47, 0.0  ;;  %v698_v17 = vunpack.c.l.bf16 %v554_v13  ;;  %v2458_v47 = vor.u32 %v2600_v46, %v2457_v41  ;;  %v2465_v13 = vld [vmem:[%s3779_s3 + $0x10] sm:$0xf]  ;;  %v2467_v46 = vld [vmem:[%s3779_s3 + $0x18] sm:$0xf0] }
 0x115   :  { %v255_v49 = vpop.f32.mrf.mxu0  ;;  %v2481_v41 = vld [vmem:[%s3779_s3 + $0x30] sm:$0xf] }
 0x116   :  { %v310_v52 = vpack.c.bf16 %v255_v49, %v255_v49 }
 0x118   :  { %v662_v58 = vunpack.c.l.bf16 %v310_v52  ;;  %1047 = vmatpush.bf16.msra.mxu1 %v3159_v56  ;;  %2634 = vmatpush.bf16.msrb.mxu3 %v3159_v56 }
 0x11a   :  { %v726_v35 = vadd.f32 %v694_v57, %v662_v58  ;;  %v572_v57 = vperm.slane %v567_v33, %v2940_v6 }
 0x11c   :  { %1048 = vmatpush.bf16.msra.mxu1 %v3121_v44  ;;  %2635 = vmatpush.bf16.msrb.mxu3 %v3121_v44  ;;  %v822_v40 = vmax.f32 %v726_v35, 0.0  ;;  %v700_v42 = vunpack.c.l.bf16 %v572_v57 }
 0x11d   :  { %v258_v61 = vpop.f32.mrf.mxu0 }
 0x11e   :  { %v311_v0 = vpack.c.bf16 %v258_v61, %v258_v61  ;;  %v3204_v55 = vpack.c.bf16 %v822_v40, %v821_v51  ;;  %v701_v51 = vunpack.c.l.bf16 %v581_v48  ;;  %v563_v40 = vperm.slane %v558_v1, %v2940_v6  ;;  %v2473_v1 = vld [vmem:[%s3779_s3 + $0x20] sm:$0xf] }
 0x120   :  { %v663_v8 = vunpack.c.l.bf16 %v311_v0  ;;  %1049 = vmatpush.bf16.msra.mxu1 %v3098_v3  ;;  %2636 = vmatpush.bf16.msrb.mxu3 %v3098_v3  ;;  %v2553_v3 = vld [vmem:[%s3779_s3 + $0xc0] sm:$0xf] }
 0x121   :  { %v2554_v9 = vor.u32 %v2624_v50, %v2553_v3  ;;  %v2630_v3 = vld [vmem:[%s3779_s3 + $0xf4] sm:$0xf0]  ;;  %v3273_v50 = vpop.permute.xlu0 %1352 }
 0x122   :  { %v727_v56 = vadd.f32 %v695_v2, %v663_v8  ;;  %v3263_v8 = vpop.permute.xlu1 %1307 }
 0x124   :  { %1050 = vmatpush.bf16.msra.mxu1 %v3054_v34  ;;  %2637 = vmatpush.bf16.msrb.mxu3 %v3054_v34  ;;  %v823_v34 = vmax.f32 %v727_v56, 0.0 }
 0x125   :  { %v260_v44 = vpop.f32.mrf.mxu0 }
 0x126   :  { %v312_v59 = vpack.c.bf16 %v260_v44, %v260_v44 }
 0x128   :  { %v664_v15 = vunpack.c.l.bf16 %v312_v59  ;;  %1051 = vmatpush.bf16.msra.mxu1 %v3015_v5  ;;  %2638 = vmatpush.bf16.msrb.mxu3 %v3015_v5 }
 0x129   :  { %v3285_v62 = vpop.permute.xlu0 %1379 }
 0x12a   :  { %v728_v7 = vadd.f32 %v696_v4, %v664_v15  ;;  %v2577_v15 = vld [vmem:[%s3779_s3 + $0xf0] sm:$0xf] }
 0x12c   :  { %1052 = vmatpush.bf16.msra.mxu1 %v2981_v43  ;;  %2639 = vmatpush.bf16.msrb.mxu3 %v2981_v43  ;;  %v824_v10 = vmax.f32 %v728_v7, 0.0  ;;  %v697_v43 = vunpack.c.l.bf16 %v545_v24  ;;  %v699_v7 = vunpack.c.l.bf16 %v563_v40 }
 0x12d   :  { %v263_v11 = vpop.f32.mrf.mxu0 }
 0x12e   :  { %v3223_v5 = vpack.c.bf16 %v824_v10, %v823_v34  ;;  %v313_v12 = vpack.c.bf16 %v263_v11, %v263_v11  ;;  %v2578_v10 = vor.u32 %v2630_v3, %v2577_v15 }
 0x12f   :  { %1113 = vmatmul.bf16.vlgmr.msrb.gmra.mxu3 %v2554_v9  ;;  %1053 = vmatmul.bf16.vlgmr.msra.gmra.mxu1 %v2458_v47  ;;  %v2563_v47 = vld [vmem:[%s3779_s3 + $0xd8] sm:$0xf0] }
 0x130   :  { %2640 = vmatpush.bf16.msra.mxu3 %v3148_v36  ;;  %v665_v14 = vunpack.c.l.bf16 %v313_v12 }
 0x131   :  { %v3313_v27 = vpop.permute.xlu0 %1406 }
 0x132   :  { %v729_v36 = vadd.f32 %v697_v43, %v665_v14  ;;  %v2602_v14 = vld [vmem:[%s3779_s3 + $0x14] sm:$0xf0]  ;;  %3787 = vst [vmem:[#allocation8_spill] sm:$0xff] %v3313_v27 }
 0x134   :  { %2641 = vmatpush.bf16.msra.mxu3 %v3157_v53  ;;  %v585_v53 = vpop.permute.xlu2 %584  ;;  %v825_v23 = vmax.f32 %v729_v36, 0.0  ;;  %v3281_v36 = vpop.permute.xlu1 %1334 }
 0x135   :  { %v265_v39 = vpop.f32.mrf.mxu0  ;;  %v590_v52 = vperm.slane %v585_v53, %v2940_v6 }
 0x136   :  { %v314_v16 = vpack.c.bf16 %v265_v39, %v265_v39 }
 0x137   :  { %v702_v2 = vunpack.c.l.bf16 %v590_v52 }
 0x138   :  { %2642 = vmatpush.bf16.msra.mxu3 %v3166_v63  ;;  %v666_v18 = vunpack.c.l.bf16 %v314_v16  ;;  %v2466_v16 = vor.u32 %v2602_v14, %v2465_v13  ;;  %v2629_v13 = vld [vmem:[%s3779_s3 + $0xf4] sm:$0xf]  ;;  %v2579_v14 = vld [vmem:[%s3779_s3 + $0xf8] sm:$0xf0] }
 0x139   :  { %v3321_v33 = vpop.permute.xlu0 %1433 }
 0x13a   :  { %v730_v21 = vadd.f32 %v698_v17, %v666_v18  ;;  %3789 = vst [vmem:[#allocation10_spill] sm:$0xff] %v3321_v33 }
 0x13c   :  { %v826_v25 = vmax.f32 %v730_v21, 0.0  ;;  %v3239_v28 = vpop.permute.xlu2 %1289  ;;  %v3289_v53 = vpop.permute.xlu1 %1361  ;;  %v2599_v21 = vld [vmem:[%s3779_s3 + $0x4] sm:$0xf] }
 0x13d   :  { %v268_v63 = vpop.f32.mrf.mxu0 }
 0x13e   :  { %v3237_v26 = vpack.c.bf16 %v826_v25, %v825_v23  ;;  %v315_v58 = vpack.c.bf16 %v268_v63, %v268_v63  ;;  %v2459_v25 = vld [vmem:[%s3779_s3 + $0x8] sm:$0xf0]  ;;  %v2623_v63 = vld [vmem:[%s3779_s3 + $0xc4] sm:$0xf] }
 0x13f   :  { %1118 = vmatmul.bf16.gmra.mxu3 %v2562_v54  ;;  %1058 = vmatmul.bf16.gmra.mxu1 %v2466_v16  ;;  %v2604_v54 = vld [vmem:[%s3779_s3 + $0x24] sm:$0xf0]  ;;  %v2462_v31 = vor.u32 %v2599_v21, %v2459_v25  ;;  %v2582_v21 = vor.u32 %v2629_v13, %v2579_v14  ;;  %v2611_v13 = vld [vmem:[%s3779_s3 + $0x64] sm:$0xf]  ;;  %v2507_v14 = vld [vmem:[%s3779_s3 + $0x68] sm:$0xf0] }
 0x140   :  { %v667_v44 = vunpack.c.l.bf16 %v315_v58 }
 0x142   :  { %v731_v11 = vadd.f32 %v699_v7, %v667_v44  ;;  %v2627_v44 = vld [vmem:[%s3779_s3 + $0xe4] sm:$0xf] }
 0x144   :  { %v3249_v37 = vpop.permute.xlu2 %1316  ;;  %v827_v17 = vmax.f32 %v731_v11, 0.0  ;;  %v2497_v11 = vld [vmem:[%s3779_s3 + $0x50] sm:$0xf] }
 0x145   :  { %v270_v30 = vpop.f32.mrf.mxu0 }
 0x146   :  { %v316_v49 = vpack.c.bf16 %v270_v30, %v270_v30  ;;  %v2474_v30 = vor.u32 %v2604_v54, %v2473_v1 }
 0x148   :  { %v668_v61 = vunpack.c.l.bf16 %v316_v49 }
 0x14a   :  { %v732_v9 = vadd.f32 %v700_v42, %v668_v61  ;;  %v2603_v61 = vld [vmem:[%s3779_s3 + $0x24] sm:$0xf]  ;;  %v2475_v42 = vld [vmem:[%s3779_s3 + $0x28] sm:$0xf0] }
 0x14b   :  { %v2478_v15 = vor.u32 %v2603_v61, %v2475_v42 }
 0x14c   :  { %v3265_v56 = vpop.permute.xlu2 %1343  ;;  %v828_v43 = vmax.f32 %v732_v9, 0.0 }
 0x14d   :  { %v273_v22 = vpop.f32.mrf.mxu0 }
 0x14e   :  { %v317_v45 = vpack.c.bf16 %v273_v22, %v273_v22  ;;  %v848_v19 = vpack.c.bf16 %v828_v43, %v827_v17  ;;  %v2601_v22 = vld [vmem:[%s3779_s3 + $0x14] sm:$0xf] }
 0x14f   :  { %1123 = vmatmul.bf16.gmra.mxu3 %v2570_v20  ;;  %1063 = vmatmul.bf16.gmra.mxu1 %v2474_v30  ;;  %v2470_v52 = vor.u32 %v2601_v22, %v2467_v46  ;;  %v2607_v30 = vld [vmem:[%s3779_s3 + $0x44] sm:$0xf] }
 0x150   :  { %v669_v35 = vunpack.c.l.bf16 %v317_v45  ;;  %v2625_v45 = vld [vmem:[%s3779_s3 + $0xd4] sm:$0xf] }
 0x151   :  { %v2566_v57 = vor.u32 %v2625_v45, %v2563_v47 }
 0x152   :  { %v733_v59 = vadd.f32 %v701_v51, %v669_v35  ;;  %v3345_v35 = vpop.permute.xlu0 %1460 }
 0x153   :  { %3792 = vst [vmem:[#allocation13_spill] sm:$0xff] %v3345_v35  ;;  %v2537_v35 = vld [vmem:[%s3779_s3 + $0xa0] sm:$0xf] }
 0x154   :  { %v829_v24 = vmax.f32 %v733_v59, 0.0  ;;  %v3283_v18 = vpop.permute.xlu2 %1370  ;;  %v2571_v59 = vld [vmem:[%s3779_s3 + $0xe8] sm:$0xf0] }
 0x155   :  { %v275_v60 = vpop.f32.mrf.mxu0  ;;  %v2574_v3 = vor.u32 %v2627_v44, %v2571_v59 }
 0x156   :  { %v318_v0 = vpack.c.bf16 %v275_v60, %v275_v60 }
 0x158   :  { %v670_v4 = vunpack.c.l.bf16 %v318_v0  ;;  %v2489_v0 = vld [vmem:[%s3779_s3 + $0x40] sm:$0xf] }
 0x15a   :  { %v734_v34 = vadd.f32 %v702_v2, %v670_v4  ;;  %v3351_v40 = vpop.permute.xlu0 %1487  ;;  %v2608_v2 = vld [vmem:[%s3779_s3 + $0x44] sm:$0xf0] }
 0x15b   :  { %3795 = vst [vmem:[#allocation16_spill] sm:$0xff] %v3351_v40  ;;  %v2490_v4 = vor.u32 %v2608_v2, %v2489_v0  ;;  %v2609_v0 = vld [vmem:[%s3779_s3 + $0x54] sm:$0xf]  ;;  %v2499_v2 = vld [vmem:[%s3779_s3 + $0x58] sm:$0xf0] }
 0x15c   :  { %v830_v12 = vmax.f32 %v734_v34, 0.0  ;;  %v3300_v23 = vpop.permute.xlu2 %1397  ;;  %v2502_v59 = vor.u32 %v2609_v0, %v2499_v2  ;;  %v2613_v2 = vld [vmem:[%s3779_s3 + $0x74] sm:$0xf] }
 0x15d   :  { %3786 = vst [vmem:[#allocation7_spill] sm:$0xff] %v3300_v23 }
 0x15e   :  { %v849_v39 = vpack.c.bf16 %v830_v12, %v829_v24  ;;  %v2610_v12 = vld [vmem:[%s3779_s3 + $0x54] sm:$0xf0]  ;;  %v2483_v24 = vld [vmem:[%s3779_s3 + $0x38] sm:$0xf0] }
 0x15f   :  { %1128 = vmatmul.bf16.gmra.mxu3 %v2578_v10  ;;  %v2605_v10 = vld [vmem:[%s3779_s3 + $0x34] sm:$0xf]  ;;  %v2498_v16 = vor.u32 %v2610_v12, %v2497_v11  ;;  %v2521_v12 = vld [vmem:[%s3779_s3 + $0x80] sm:$0xf] }
 0x160   :  { %1137 = vmatpush.bf16.msra.mxu2 %v849_v39  ;;  %2643 = vmatpush.bf16.msra.mxu3 %v849_v39 }
 0x162   :  { %v3375_v34 = vpop.permute.xlu0 %1514 }
 0x164   :  { %1138 = vmatpush.bf16.msra.mxu2 %v848_v19  ;;  %2644 = vmatpush.bf16.msra.mxu3 %v848_v19  ;;  %v3319_v20 = vpop.permute.xlu2 %1424  ;;  %v2486_v19 = vor.u32 %v2605_v10, %v2483_v24  ;;  %v2616_v24 = vld [vmem:[%s3779_s3 + $0x84] sm:$0xf0] }
 0x165   :  { %3788 = vst [vmem:[#allocation9_spill] sm:$0xff] %v3319_v20 }
 0x168   :  { %1139 = vmatpush.bf16.msra.mxu2 %v3237_v26  ;;  %2645 = vmatpush.bf16.msra.mxu3 %v3237_v26  ;;  %v2555_v26 = vld [vmem:[%s3779_s3 + $0xc8] sm:$0xf0] }
 0x169   :  { %v2558_v32 = vor.u32 %v2623_v63, %v2555_v26  ;;  %v2505_v63 = vld [vmem:[%s3779_s3 + $0x60] sm:$0xf]  ;;  %v2612_v26 = vld [vmem:[%s3779_s3 + $0x64] sm:$0xf0] }
 0x16a   :  { %v3399_v17 = vpop.permute.xlu0 %1541 }
 0x16c   :  { %1140 = vmatpush.bf16.msra.mxu2 %v3223_v5  ;;  %2646 = vmatpush.bf16.msra.mxu3 %v3223_v5  ;;  %v3317_v5 = vpop.permute.xlu1 %1388  ;;  %v3343_v58 = vpop.permute.xlu2 %1451 }
 0x16d   :  { %3791 = vst [vmem:[#allocation12_spill] sm:$0xff] %v3343_v58 }
 0x170   :  { %1141 = vmatpush.bf16.msra.mxu2 %v3204_v55  ;;  %2647 = vmatpush.bf16.msra.mxu3 %v3204_v55  ;;  %v2606_v55 = vld [vmem:[%s3779_s3 + $0x34] sm:$0xf0] }
 0x171   :  { %v2482_v48 = vor.u32 %v2606_v55, %v2481_v41 }
 0x172   :  { %v3405_v25 = vpop.permute.xlu0 %1568 }
 0x173   :  { %1142 = vmatmul.bf16.vlgmr.msra.gmra.mxu2 %v2462_v31  ;;  %1202 = vmatmul.bf16.vlgmr.msra.gmra.mxu3 %v2558_v32  ;;  %v2491_v31 = vld [vmem:[%s3779_s3 + $0x48] sm:$0xf0]  ;;  %v2506_v32 = vor.u32 %v2612_v26, %v2505_v63 }
 0x174   :  { %v3341_v49 = vpop.permute.xlu1 %1415  ;;  %1068 = vmatmul.bf16.gmra.mxu1 %v2482_v48  ;;  %v3349_v51 = vpop.permute.xlu2 %1478  ;;  %v2494_v22 = vor.u32 %v2607_v30, %v2491_v31 }
 0x175   :  { %3790 = vst [vmem:[#allocation11_spill] sm:$0xff] %v3341_v49 }
 0x176   :  { %3794 = vst [vmem:[#allocation15_spill] sm:$0xff] %v3349_v51  ;;  %v2615_v51 = vld [vmem:[%s3779_s3 + $0x84] sm:$0xf] }
 0x17a   :  { %v3425_v45 = vpop.permute.xlu0 %1835 }
 0x17c   :  { %v3347_v60 = vpop.permute.xlu1 %1442  ;;  %v3373_v9 = vpop.permute.xlu2 %1505 }
 0x17d   :  { %3793 = vst [vmem:[#allocation14_spill] sm:$0xff] %v3347_v60 }
 0x182   :  { %v3445_v42 = vpop.permute.xlu0 %1862 }
 0x183   :  { %1147 = vmatmul.bf16.gmra.mxu2 %v2470_v52  ;;  %1207 = vmatmul.bf16.gmra.mxu3 %v2566_v57  ;;  %v2513_v52 = vld [vmem:[%s3779_s3 + $0x70] sm:$0xf]  ;;  %v2614_v57 = vld [vmem:[%s3779_s3 + $0x74] sm:$0xf0] }
 0x184   :  { %1073 = vmatmul.bf16.gmra.mxu1 %v2490_v4  ;;  %v3371_v7 = vpop.permute.xlu1 %1469  ;;  %v3397_v43 = vpop.permute.xlu2 %1532  ;;  %v2514_v44 = vor.u32 %v2614_v57, %v2513_v52 }
 0x185   :  { %3796 = vst [vmem:[#allocation17_spill] sm:$0xff] %v3371_v7 }
 0x18a   :  { %v3453_v10 = vpop.permute.xlu0 %1889 }
 0x18c   :  { %v3395_v39 = vpop.permute.xlu1 %1496  ;;  %v3403_v54 = vpop.permute.xlu2 %1559 }
 0x18d   :  { %3797 = vst [vmem:[#allocation18_spill] sm:$0xff] %v3395_v39 }
 0x192   :  { %v3473_v30 = vpop.permute.xlu0 %1916 }
 0x193   :  { %1152 = vmatmul.bf16.gmra.mxu2 %v2478_v15  ;;  %1212 = vmatmul.bf16.gmra.mxu3 %v2574_v3  ;;  %3799 = vst [vmem:[#allocation20_spill] sm:$0xff] %v3473_v30 }
 0x194   :  { %1078 = vmatmul.bf16.gmra.mxu1 %v2498_v16  ;;  %v3401_v1 = vpop.permute.xlu1 %1523  ;;  %v3421_v55 = vpop.permute.xlu2 %1826  ;;  %v2522_v16 = vor.u32 %v2616_v24, %v2521_v12  ;;  %v2529_v24 = vld [vmem:[%s3779_s3 + $0x90] sm:$0xf] }
 0x19a   :  { %v3483_v0 = vpop.permute.xlu0 %1943 }
 0x19b   :  { %3801 = vst [vmem:[#allocation22_spill] sm:$0xff] %v3483_v0 }
 0x19c   :  { %v3419_v41 = vpop.permute.xlu1 %1550  ;;  %v3437_v61 = vpop.permute.xlu2 %1853 }
 0x1a3   :  { %1157 = vmatmul.bf16.gmra.mxu2 %v2486_v19  ;;  %1217 = vmatmul.bf16.gmra.mxu3 %v2582_v21  ;;  %v2510_v21 = vor.u32 %v2611_v13, %v2507_v14  ;;  %v2618_v13 = vld [vmem:[%s3779_s3 + $0x94] sm:$0xf0] }
 0x1a4   :  { %1083 = vmatmul.bf16.gmra.mxu1 %v2506_v32  ;;  %v3429_v48 = vpop.permute.xlu1 %1817  ;;  %v3451_v3 = vpop.permute.xlu2 %1880  ;;  %v2530_v14 = vor.u32 %v2618_v13, %v2529_v24  ;;  %v2523_v24 = vld [vmem:[%s3779_s3 + $0x88] sm:$0xf0] }
 0x1a5   :  { %v2526_v7 = vor.u32 %v2615_v51, %v2523_v24  ;;  %v1511_v51 = vperm.slane %v3373_v9, %v2940_v6  ;;  %v2617_v9 = vld [vmem:[%s3779_s3 + $0x94] sm:$0xf] }
 0x1ac   :  { %v3449_v15 = vpop.permute.xlu1 %1844  ;;  %v1054_v63 = vpop.f32.mrf.mxu1 }
 0x1ad   :  { %v3471_v26 = vpop.permute.xlu2 %1907 }
 0x1ae   :  { %3798 = vst [vmem:[#allocation19_spill] sm:$0xff] %v3471_v26 }
 0x1b2   :  { %v3423_v46 = vpop.f32.mrf.mxu3 }
 0x1b3   :  { %1162 = vmatmul.bf16.gmra.mxu2 %v2494_v22 }
 0x1b4   :  { %1088 = vmatmul.bf16.gmra.mxu1 %v2514_v44  ;;  %v3469_v19 = vpop.permute.xlu1 %1871  ;;  %v1056_v32 = vpop.f32.mrf.mxu1  ;;  %v2515_v44 = vld [vmem:[%s3779_s3 + $0x78] sm:$0xf0] }
 0x1b5   :  { %v3479_v52 = vpop.permute.xlu2 %1934 }
 0x1b6   :  { %3800 = vst [vmem:[#allocation21_spill] sm:$0xff] %v3479_v52 }
 0x1ba   :  { %v3427_v47 = vpop.f32.mrf.mxu3 }
 0x1bc   :  { %v3477_v22 = vpop.permute.xlu1 %1898  ;;  %v3491_v12 = vpop.f32.mrf.mxu1 }
 0x1bd   :  { %v3503_v39 = vpop.permute.xlu2 %2072 }
 0x1be   :  { %3803 = vst [vmem:[#allocation24_spill] sm:$0xff] %v3503_v39 }
 0x1c2   :  { %v3447_v4 = vpop.f32.mrf.mxu3 }
 0x1c3   :  { %1167 = vmatmul.bf16.gmra.mxu2 %v2502_v59  ;;  %v2518_v59 = vor.u32 %v2613_v2, %v2515_v44  ;;  %v3505_v2 = vpop.permute.xlu0 %2095 }
 0x1c4   :  { %1093 = vmatmul.bf16.gmra.mxu1 %v2522_v16  ;;  %3804 = vst [vmem:[#allocation25_spill] sm:$0xff] %v3505_v2  ;;  %v3507_v44 = vpop.f32.mrf.mxu1  ;;  %v2620_v2 = vld [vmem:[%s3779_s3 + $0xa4] sm:$0xf0] }
 0x1c5   :  { %v2538_v58 = vor.u32 %v2620_v2, %v2537_v35 }
 0x1ca   :  { %v3455_v11 = vpop.f32.mrf.mxu3 }
 0x1cc   :  { %v3523_v39 = vpop.f32.mrf.mxu1 }
 0x1d2   :  { %v3475_v31 = vpop.f32.mrf.mxu3 }
 0x1d3   :  { %1172 = vmatmul.bf16.gmra.mxu2 %v2510_v21  ;;  %v3501_v21 = vpop.permute.xlu1 %1925 }
 0x1d4   :  { %1098 = vmatmul.bf16.gmra.mxu1 %v2530_v14  ;;  %3802 = vst [vmem:[#allocation23_spill] sm:$0xff] %v3501_v21  ;;  %v3519_v14 = vpop.permute.xlu2 %2113  ;;  %v1631_v21 = vunpack.c.l.bf16 %v1511_v51 }
 0x1d5   :  { %3806 = vst [vmem:[#allocation27_spill] sm:$0xff] %v3519_v14  ;;  %v1295_v14 = vperm.slane %v3239_v28, %v2940_v6 }
 0x1d7   :  { %v1607_v2 = vunpack.c.l.bf16 %v1295_v14  ;;  %v1520_v14 = vperm.slane %v3375_v34, %v2940_v6 }
 0x1da   :  { %v3481_v57 = vpop.f32.mrf.mxu3 }
 0x1db   :  { %v3517_v13 = vpop.permute.xlu1 %1952 }
 0x1dc   :  { %3805 = vst [vmem:[#allocation26_spill] sm:$0xff] %v3517_v13  ;;  %v3538_v33 = vpop.permute.xlu2 %2140 }
 0x1dd   :  { %3809 = vst [vmem:[#allocation30_spill] sm:$0xff] %v3538_v33 }
 0x1e2   :  { %v3499_v16 = vpop.f32.mrf.mxu3 }
 0x1e3   :  { %1177 = vmatmul.bf16.gmra.mxu2 %v2518_v59  ;;  %v3521_v59 = vpop.permute.xlu0 %2122  ;;  %v3535_v24 = vpop.permute.xlu1 %2104 }
 0x1e4   :  { %3807 = vst [vmem:[#allocation28_spill] sm:$0xff] %v3521_v59  ;;  %1103 = vmatmul.bf16.gmra.mxu1 %v2538_v58  ;;  %v3542_v58 = vpop.f32.mrf.mxu1 }
 0x1e5   :  { %3808 = vst [vmem:[#allocation29_spill] sm:$0xff] %v3535_v24  ;;  %v2545_v24 = vld [vmem:[%s3779_s3 + $0xb0] sm:$0xf] }
 0x1ea   :  { %v3509_v40 = vpop.f32.mrf.mxu3 }
 0x1eb   :  { %v3540_v20 = vpop.permute.xlu0 %2149 }
 0x1ec   :  { %3810 = vst [vmem:[#allocation31_spill] sm:$0xff] %v3540_v20 }
 0x1f3   :  { %1182 = vmatmul.bf16.gmra.mxu2 %v2526_v7 }
 0x1f6   :  { %v1143_v60 = vpop.f32.mrf.mxu2  ;;  %v1203_v0 = vpop.f32.mrf.mxu3 }
 0x1f7   :  { %v1144_v59 = vadd.f32 %v1143_v60, %v1054_v63  ;;  %v1204_v13 = vadd.f32 %v1203_v0, %v3423_v46  ;;  %v2531_v60 = vld [vmem:[%s3779_s3 + $0x98] sm:$0xf0]  ;;  %v1304_v0 = vperm.slane %v3241_v29, %v2940_v6  ;;  %v3561_v29 = vpop.permute.xlu1 %2131 }
 0x1f8   :  { %3811 = vst [vmem:[#allocation32_spill] sm:$0xff] %v3561_v29 }
 0x1f9   :  { %v1223_v35 = vpack.c.bf16 %v1144_v59, %v1144_v59  ;;  %v1247_v7 = vpack.c.bf16 %v1204_v13, %v1204_v13 }
 0x1fb   :  { %v1575_v52 = vunpack.c.l.bf16 %v1223_v35  ;;  %v1599_v28 = vunpack.c.l.bf16 %v1247_v7  ;;  %v2534_v7 = vor.u32 %v2617_v9, %v2531_v60 }
 0x1fd   :  { %v1639_v46 = vadd.f32 %v1607_v2, %v1575_v52  ;;  %v1663_v63 = vadd.f32 %v1631_v21, %v1599_v28  ;;  %v2622_v52 = vld [vmem:[%s3779_s3 + $0xb4] sm:$0xf0]  ;;  %v2168_v28 = vpop.permute.xlu2 %2167 }
 0x1fe   :  { %v1145_v13 = vpop.f32.mrf.mxu2  ;;  %v1205_v59 = vpop.f32.mrf.mxu3  ;;  %v2546_v34 = vor.u32 %v2622_v52, %v2545_v24  ;;  %v1529_v24 = vperm.slane %v3401_v1, %v2940_v6 }
 0x1ff   :  { %v1146_v51 = vadd.f32 %v1145_v13, %v1056_v32  ;;  %v1206_v35 = vadd.f32 %v1205_v59, %v3427_v47  ;;  %v1735_v20 = vmax.f32 %v1639_v46, 0.0  ;;  %v1759_v33 = vmax.f32 %v1663_v63, 0.0  ;;  %v2177_v47 = vpop.permute.xlu0 %2176  ;;  %v3563_v46 = vpop.f32.mrf.mxu1 }
 0x200   :  { %v1608_v32 = vunpack.c.l.bf16 %v1304_v0  ;;  %v1632_v13 = vunpack.c.l.bf16 %v1520_v14  ;;  %v1313_v63 = vperm.slane %v3263_v8, %v2940_v6  ;;  %v1832_v59 = vperm.slane %v3421_v55, %v2940_v6  ;;  %1108 = vmatmul.bf16.gmra.mxu1 %v2546_v34  ;;  %v3577_v26 = vpop.permute.xlu1 %2158 }
 0x201   :  { %v1224_v21 = vpack.c.bf16 %v1146_v51, %v1146_v51  ;;  %v1248_v2 = vpack.c.bf16 %v1206_v35, %v1206_v35  ;;  %v1767_v49 = vpack.c.bf16 %v1735_v20, %v1735_v20  ;;  %v1791_v29 = vpack.c.bf16 %v1759_v33, %v1759_v33 }
 0x202   :  { %v1823_v0 = vperm.slane %v3429_v48, %v2940_v6  ;;  %v2173_v14 = vperm.slane %v2168_v28, %v2940_v6  ;;  %v1609_v55 = vunpack.c.l.bf16 %v1313_v63  ;;  %v1976_v34 = vunpack.c.l.bf16 %v1832_v59 }
 0x203   :  { %v1576_v9 = vunpack.c.l.bf16 %v1224_v21  ;;  %v1600_v60 = vunpack.c.l.bf16 %v1248_v2  ;;  %1187 = vmatmul.bf16.gmra.mxu2 %v2534_v7  ;;  %v2182_v7 = vperm.slane %v2177_v47, %v2940_v6  ;;  %v1633_v27 = vunpack.c.l.bf16 %v1529_v24 }
 0x204   :  { %v1975_v28 = vunpack.c.l.bf16 %v1823_v0  ;;  %v2261_v30 = vunpack.c.l.bf16 %v2173_v14 }
 0x205   :  { %v1640_v51 = vadd.f32 %v1608_v32, %v1576_v9  ;;  %v1664_v35 = vadd.f32 %v1632_v13, %v1600_v60  ;;  %v1959_v32 = vunpack.c.l.bf16 %v1767_v49  ;;  %v2245_v13 = vunpack.c.l.bf16 %v1791_v29  ;;  %v2619_v49 = vld [vmem:[%s3779_s3 + $0xa4] sm:$0xf]  ;;  %v2539_v29 = vld [vmem:[%s3779_s3 + $0xa8] sm:$0xf0] }
 0x206   :  { %v1148_v52 = vpop.f32.mrf.mxu2  ;;  %v1208_v8 = vpop.f32.mrf.mxu3  ;;  %v2262_v47 = vunpack.c.l.bf16 %v2182_v7 }
 0x207   :  { %v1736_v21 = vmax.f32 %v1640_v51, 0.0  ;;  %v1760_v2 = vmax.f32 %v1664_v35, 0.0  ;;  %v1149_v20 = vadd.f32 %v1148_v52, %v3491_v12  ;;  %v1209_v33 = vadd.f32 %v1208_v8, %v3447_v4  ;;  %v3585_v14 = vpop.f32.mrf.mxu1 }
 0x208   :  { %v1991_v52 = vmul.f32 %v1975_v28, %v1959_v32  ;;  %v2277_v4 = vmul.f32 %v2261_v30, %v2245_v13  ;;  %v2542_v30 = vor.u32 %v2619_v49, %v2539_v29  ;;  %v2195_v13 = vpop.permute.xlu2 %2194  ;;  %v2186_v28 = vpop.permute.xlu1 %2185 }
 0x209   :  { %v1768_v1 = vpack.c.bf16 %v1736_v21, %v1736_v21  ;;  %v1792_v9 = vpack.c.bf16 %v1760_v2, %v1760_v2  ;;  %v1225_v60 = vpack.c.bf16 %v1149_v20, %v1149_v20  ;;  %v1249_v48 = vpack.c.bf16 %v1209_v33, %v1209_v33 }
 0x20a   :  { %v1322_v20 = vperm.slane %v3249_v37, %v2940_v6  ;;  %v1547_v37 = vperm.slane %v3399_v17, %v2940_v6 }
 0x20b   :  { %v1960_v51 = vunpack.c.l.bf16 %v1768_v1  ;;  %v2246_v35 = vunpack.c.l.bf16 %v1792_v9  ;;  %v1577_v23 = vunpack.c.l.bf16 %v1225_v60  ;;  %v1601_v12 = vunpack.c.l.bf16 %v1249_v48 }
 0x20c   :  { %v1610_v9 = vunpack.c.l.bf16 %v1322_v20  ;;  %v1331_v60 = vperm.slane %v3251_v38, %v2940_v6 }
 0x20d   :  { %v1992_v63 = vmul.f32 %v1976_v34, %v1960_v51  ;;  %v2278_v59 = vmul.f32 %v2262_v47, %v2246_v35  ;;  %v1641_v24 = vadd.f32 %v1609_v55, %v1577_v23  ;;  %v1665_v0 = vadd.f32 %v1633_v27, %v1601_v12 }
 0x20e   :  { %v1150_v7 = vpop.f32.mrf.mxu2  ;;  %v1210_v8 = vpop.f32.mrf.mxu3  ;;  %v1538_v23 = vperm.slane %v3397_v43, %v2940_v6  ;;  %v1841_v47 = vperm.slane %v3425_v45, %v2940_v6  ;;  %v2200_v51 = vperm.slane %v2195_v13, %v2940_v6 }
 0x20f   :  { %v3587_v21 = vpack.c.bf16 %v1992_v63, %v1991_v52  ;;  %v3589_v2 = vpack.c.bf16 %v2278_v59, %v2277_v4  ;;  %v1151_v33 = vadd.f32 %v1150_v7, %v3507_v44  ;;  %v1211_v32 = vadd.f32 %v1210_v8, %v3455_v11 }
 0x210   :  { %v1737_v27 = vmax.f32 %v1641_v24, 0.0  ;;  %v1761_v1 = vmax.f32 %v1665_v0, 0.0  ;;  %v1634_v44 = vunpack.c.l.bf16 %v1538_v23  ;;  %v1850_v11 = vperm.slane %v3449_v15, %v2940_v6  ;;  %v3609_v0 = vpop.f32.mrf.mxu1 }
 0x211   :  { %v1226_v55 = vpack.c.bf16 %v1151_v33, %v1151_v33  ;;  %v1250_v34 = vpack.c.bf16 %v1211_v32, %v1211_v32  ;;  %v1611_v63 = vunpack.c.l.bf16 %v1331_v60  ;;  %v1635_v59 = vunpack.c.l.bf16 %v1547_v37  ;;  %v2621_v60 = vld [vmem:[%s3779_s3 + $0xb4] sm:$0xf]  ;;  %v2547_v37 = vld [vmem:[%s3779_s3 + $0xb8] sm:$0xf0]  ;;  %s2682_s3 = smov [#allocation4]  }
 0x212   :  { %v1769_v35 = vpack.c.bf16 %v1737_v27, %v1737_v27  ;;  %v1793_v38 = vpack.c.bf16 %v1761_v1, %v1761_v1  ;;  %v2191_v15 = vperm.slane %v2186_v28, %v2940_v6  ;;  %v1978_v45 = vunpack.c.l.bf16 %v1850_v11  ;;  %s2364_s8 = sshll.u32 %s2682_s3, 4  ;;  %s2365_s8 = int_to_ptr.vmem [resolvable:$true] %s2364_s8 }
 0x213   :  { %1192 = vmatmul.bf16.gmra.mxu2 %v2542_v30  ;;  %v1578_v48 = vunpack.c.l.bf16 %v1226_v55  ;;  %v1602_v43 = vunpack.c.l.bf16 %v1250_v34  ;;  %v1977_v20 = vunpack.c.l.bf16 %v1841_v47  ;;  %v2264_v33 = vunpack.c.l.bf16 %v2200_v51 }
 0x214   :  { %v1961_v32 = vunpack.c.l.bf16 %v1769_v35  ;;  %v2247_v27 = vunpack.c.l.bf16 %v1793_v38  ;;  %v2015_v13 = vunpack.c.l.bf16 %v3587_v21  ;;  %v2016_v1 = vunpack.c.h.bf16 %v3587_v21 }
 0x215   :  { %v1642_v12 = vadd.f32 %v1610_v9, %v1578_v48  ;;  %v1666_v49 = vadd.f32 %v1634_v44, %v1602_v43  ;;  %v1340_v28 = vperm.slane %v3281_v36, %v2940_v6  ;;  %v1556_v43 = vperm.slane %v3419_v41, %v2940_v6 }
 0x216   :  { %v1153_v52 = vpop.f32.mrf.mxu2  ;;  %v1213_v4 = vpop.f32.mrf.mxu3  ;;  %v1993_v21 = vmul.f32 %v1977_v20, %v1961_v32  ;;  %v2550_v38 = vor.u32 %v2621_v60, %v2547_v37 }
 0x217   :  { %v1154_v17 = vadd.f32 %v1153_v52, %v3523_v39  ;;  %v1214_v29 = vadd.f32 %v1213_v4, %v3475_v31  ;;  %v1738_v24 = vmax.f32 %v1642_v12, 0.0  ;;  %v1762_v7 = vmax.f32 %v1666_v49, 0.0 }
 0x218   :  { %v2263_v31 = vunpack.c.l.bf16 %v2191_v15  ;;  %v2032_v49 = vsel %vm2031_vm1, %v2015_v13, 0.0 }
 0x219   :  { %v1227_v8 = vpack.c.bf16 %v1154_v17, %v1154_v17  ;;  %v1251_v30 = vpack.c.bf16 %v1214_v29, %v1214_v29  ;;  %v1770_v23 = vpack.c.bf16 %v1738_v24, %v1738_v24  ;;  %v1794_v55 = vpack.c.bf16 %v1762_v7, %v1762_v7 }
 0x21a   :  { %v2279_v12 = vmul.f32 %v2263_v31, %v2247_v27  ;;  %v2033_v17 = vsel %vm2031_vm1, %v2016_v1, 0.0  ;;  %v1565_v27 = vperm.slane %v3403_v54, %v2940_v6 }
 0x21b   :  { %v1579_v39 = vunpack.c.l.bf16 %v1227_v8  ;;  %v1603_v34 = vunpack.c.l.bf16 %v1251_v30  ;;  %v1962_v9 = vunpack.c.l.bf16 %v1770_v23  ;;  %v2248_v48 = vunpack.c.l.bf16 %v1794_v55  ;;  %v3629_v8 = vpop.f32.mrf.mxu1 }
 0x21c   :  { %v1612_v30 = vunpack.c.l.bf16 %v1340_v28  ;;  %v2034_v20 = vadd.f32 %v2033_v17, %v2032_v49  ;;  %v1859_v55 = vperm.slane %v3437_v61, %v2940_v6 }
 0x21d   :  { %v1643_v44 = vadd.f32 %v1611_v63, %v1579_v39  ;;  %v1667_v11 = vadd.f32 %v1635_v59, %v1603_v34  ;;  %v1994_v47 = vmul.f32 %v1978_v45, %v1962_v9  ;;  %v2280_v52 = vmul.f32 %v2264_v33, %v2248_v48  ;;  %v2213_v39 = vpop.permute.xlu1 %2212  ;;  %v2204_v34 = vpop.permute.xlu0 %2203 }
 0x21e   :  { %v1155_v51 = vpop.f32.mrf.mxu2  ;;  %v1215_v35 = vpop.f32.mrf.mxu3  ;;  %v1636_v33 = vunpack.c.l.bf16 %v1556_v43  ;;  %v2218_v61 = vperm.slane %v2213_v39, %v2940_v6  ;;  %v2209_v43 = vperm.slane %v2204_v34, %v2940_v6  ;;  %v1574_v39 = vperm.slane %v3405_v25, %v2940_v6 }
 0x21f   :  { %v1156_v4 = vadd.f32 %v1155_v51, %v3542_v58  ;;  %v2008_v29 = vpack.c.bf16 %v1994_v47, %v1993_v21  ;;  %v1216_v63 = vadd.f32 %v1215_v35, %v3481_v57  ;;  %v3627_v36 = vpack.c.bf16 %v2280_v52, %v2279_v12 }
 0x220   :  { %v1739_v59 = vmax.f32 %v1643_v44, 0.0  ;;  %v1763_v45 = vmax.f32 %v1667_v11, 0.0  ;;  %v1349_v58 = vperm.slane %v3265_v56, %v2940_v6  ;;  %v1868_v44 = vperm.slane %v3445_v42, %v2940_v6 }
 0x221   :  { %v1228_v41 = vpack.c.bf16 %v1156_v4, %v1156_v4  ;;  %v2017_v15 = vunpack.c.l.bf16 %v2008_v29  ;;  %v2018_v24 = vunpack.c.h.bf16 %v2008_v29  ;;  %v1252_v7 = vpack.c.bf16 %v1216_v63, %v1216_v63 }
 0x222   :  { %v1771_v13 = vpack.c.bf16 %v1739_v59, %v1739_v59  ;;  %v1795_v1 = vpack.c.bf16 %v1763_v45, %v1763_v45  ;;  %v1613_v51 = vunpack.c.l.bf16 %v1349_v58  ;;  %v1637_v35 = vunpack.c.l.bf16 %v1565_v27 }
 0x223   :  { %1197 = vmatmul.bf16.gmra.mxu2 %v2550_v38  ;;  %v2035_v32 = vsel %vm2031_vm1, %v2017_v15, 0.0  ;;  %v1580_v57 = vunpack.c.l.bf16 %v1228_v41  ;;  %v1604_v23 = vunpack.c.l.bf16 %v1252_v7  ;;  %v2037_v56 = vsel %vm2031_vm1, %v2018_v24, 0.0  ;;  %v3645_v24 = vpop.f32.mrf.mxu1 }
 0x224   :  { %v2036_v31 = vadd.f32 %v2035_v32, %v2034_v20  ;;  %v1963_v4 = vunpack.c.l.bf16 %v1771_v13  ;;  %v2249_v38 = vunpack.c.l.bf16 %v1795_v1  ;;  %v1979_v42 = vunpack.c.l.bf16 %v1859_v55 }
 0x225   :  { %v1644_v9 = vadd.f32 %v1612_v30, %v1580_v57  ;;  %v1668_v60 = vadd.f32 %v1636_v33, %v1604_v23  ;;  %v1980_v29 = vunpack.c.l.bf16 %v1868_v44  ;;  %v2266_v59 = vunpack.c.l.bf16 %v2218_v61  ;;  %v2231_v25 = vpop.permute.xlu0 %2230 }
 0x226   :  { %v1158_v37 = vpop.f32.mrf.mxu2  ;;  %v1218_v48 = vpop.f32.mrf.mxu3  ;;  %v2038_v11 = vadd.f32 %v2037_v56, %v2036_v31  ;;  %v1995_v58 = vmul.f32 %v1979_v42, %v1963_v4  ;;  %v1358_v23 = vperm.slane %v3273_v50, %v2940_v6  ;;  %v1638_v50 = vunpack.c.l.bf16 %v1574_v39 }
 0x227   :  { %v1159_v54 = vadd.f32 %v1158_v37, %v3563_v46  ;;  %v1219_v28 = vadd.f32 %v1218_v48, %v3499_v16  ;;  %v1740_v21 = vmax.f32 %v1644_v9, 0.0  ;;  %v1764_v47 = vmax.f32 %v1668_v60, 0.0 }
 0x228   :  { %v2265_v16 = vunpack.c.l.bf16 %v2209_v43  ;;  %v1614_v48 = vunpack.c.l.bf16 %v1358_v23  ;;  %v2236_v42 = vperm.slane %v2231_v25, %v2940_v6 }
 0x229   :  { %v1229_v12 = vpack.c.bf16 %v1159_v54, %v1159_v54  ;;  %v1253_v52 = vpack.c.bf16 %v1219_v28, %v1219_v28  ;;  %v1772_v49 = vpack.c.bf16 %v1740_v21, %v1740_v21  ;;  %v1796_v17 = vpack.c.bf16 %v1764_v47, %v1764_v47  ;;  %v2222_v28 = vpop.permute.xlu2 %2221 }
 0x22a   :  { %v2281_v30 = vmul.f32 %v2265_v16, %v2249_v38  ;;  %v1886_v47 = vperm.slane %v3451_v3, %v2940_v6  ;;  %v1877_v38 = vperm.slane %v3469_v19, %v2940_v6 }
 0x22b   :  { %v1581_v63 = vunpack.c.l.bf16 %v1229_v12  ;;  %v1605_v46 = vunpack.c.l.bf16 %v1253_v52  ;;  %v1964_v41 = vunpack.c.l.bf16 %v1772_v49  ;;  %v2250_v15 = vunpack.c.l.bf16 %v1796_v17  ;;  %v3661_v4 = vpop.f32.mrf.mxu1 }
 0x22d   :  { %v1645_v45 = vadd.f32 %v1613_v51, %v1581_v63  ;;  %v1669_v7 = vadd.f32 %v1637_v35, %v1605_v46  ;;  %v1996_v20 = vmul.f32 %v1980_v29, %v1964_v41  ;;  %v2282_v33 = vmul.f32 %v2266_v59, %v2250_v15 }
 0x22e   :  { %v1160_v32 = vpop.f32.mrf.mxu2  ;;  %v1220_v57 = vpop.f32.mrf.mxu3  ;;  %v1982_v15 = vunpack.c.l.bf16 %v1886_v47 }
 0x22f   :  { %v1161_v27 = vadd.f32 %v1160_v32, %v3585_v14  ;;  %v1221_v55 = vadd.f32 %v1220_v57, %v3509_v40  ;;  %v2009_v34 = vpack.c.bf16 %v1996_v20, %v1995_v58  ;;  %v3653_v31 = vpack.c.bf16 %v2282_v33, %v2281_v30 }
 0x230   :  { %v1741_v13 = vmax.f32 %v1645_v45, 0.0  ;;  %v1765_v37 = vmax.f32 %v1669_v7, 0.0  ;;  %v1367_v40 = vperm.slane %v3289_v53, %v2940_v6  ;;  %v1981_v45 = vunpack.c.l.bf16 %v1877_v38 }
 0x231   :  { %v1230_v56 = vpack.c.bf16 %v1161_v27, %v1161_v27  ;;  %v1254_v1 = vpack.c.bf16 %v1221_v55, %v1221_v55  ;;  %v2019_v9 = vunpack.c.l.bf16 %v2009_v34  ;;  %v2020_v60 = vunpack.c.h.bf16 %v2009_v34 }
 0x232   :  { %v1773_v43 = vpack.c.bf16 %v1741_v13, %v1741_v13  ;;  %v1797_v35 = vpack.c.bf16 %v1765_v37, %v1765_v37  ;;  %v1615_v59 = vunpack.c.l.bf16 %v1367_v40  ;;  %v2268_v30 = vunpack.c.l.bf16 %v2236_v42 }
 0x233   :  { %v1582_v44 = vunpack.c.l.bf16 %v1230_v56  ;;  %v1606_v54 = vunpack.c.l.bf16 %v1254_v1  ;;  %v2039_v14 = vsel %vm2031_vm1, %v2019_v9, 0.0  ;;  %v2041_v51 = vsel %vm2031_vm1, %v2020_v60, 0.0  ;;  %v1084_v56 = vpop.f32.mrf.mxu1 }
 0x234   :  { %v2040_v61 = vadd.f32 %v2039_v14, %v2038_v11  ;;  %v2227_v11 = vperm.slane %v2222_v28, %v2940_v6  ;;  %v1965_v3 = vunpack.c.l.bf16 %v1773_v43  ;;  %v2251_v16 = vunpack.c.l.bf16 %v1797_v35 }
 0x235   :  { %v1646_v21 = vadd.f32 %v1614_v48, %v1582_v44  ;;  %v1670_v12 = vadd.f32 %v1638_v50, %v1606_v54  ;;  %v1376_v55 = vperm.slane %v3283_v18, %v2940_v6  ;;  %v1385_v18 = vperm.slane %v3285_v62, %v2940_v6 }
 0x236   :  { %v1163_v52 = vpop.f32.mrf.mxu2  ;;  %v2042_v49 = vadd.f32 %v2041_v51, %v2040_v61  ;;  %v2267_v19 = vunpack.c.l.bf16 %v2227_v11  ;;  %v1997_v33 = vmul.f32 %v1981_v45, %v1965_v3  ;;  %v1904_v61 = vperm.slane %v3477_v22, %v2940_v6 }
 0x237   :  { %v1742_v53 = vmax.f32 %v1646_v21, 0.0  ;;  %v1164_v17 = vadd.f32 %v1163_v52, %v3609_v0  ;;  %v1766_v29 = vmax.f32 %v1670_v12, 0.0  ;;  %v1616_v48 = vunpack.c.l.bf16 %v1376_v55 }
 0x238   :  { %v2283_v57 = vmul.f32 %v2267_v19, %v2251_v16  ;;  %v1895_v43 = vperm.slane %v3453_v10, %v2940_v6  ;;  %v1617_v52 = vunpack.c.l.bf16 %v1385_v18  ;;  %v1394_v22 = vperm.slane %v3317_v5, %v2940_v6 }
 0x239   :  { %v1774_v63 = vpack.c.bf16 %v1742_v53, %v1742_v53  ;;  %v1231_v46 = vpack.c.bf16 %v1164_v17, %v1164_v17  ;;  %v1798_v41 = vpack.c.bf16 %v1766_v29, %v1766_v29 }
 0x23a   :  { %v1983_v53 = vunpack.c.l.bf16 %v1895_v43 }
 0x23b   :  { %v1966_v7 = vunpack.c.l.bf16 %v1774_v63  ;;  %v1583_v58 = vunpack.c.l.bf16 %v1231_v46  ;;  %v2252_v20 = vunpack.c.l.bf16 %v1798_v41  ;;  %v1086_v38 = vpop.f32.mrf.mxu1  ;;  %v1618_v41 = vunpack.c.l.bf16 %v1394_v22 }
 0x23d   :  { %v1998_v0 = vmul.f32 %v1982_v15, %v1966_v7  ;;  %v1647_v32 = vadd.f32 %v1615_v59, %v1583_v58  ;;  %v2284_v23 = vmul.f32 %v2268_v30, %v2252_v20 }
 0x23e   :  { %v1165_v27 = vpop.f32.mrf.mxu2 }
 0x23f   :  { %v2010_v39 = vpack.c.bf16 %v1998_v0, %v1997_v33  ;;  %v1166_v34 = vadd.f32 %v1165_v27, %v3629_v8  ;;  %v3671_v13 = vpack.c.bf16 %v2284_v23, %v2283_v57  ;;  %v1743_v60 = vmax.f32 %v1647_v32, 0.0  ;;  %v3812_v33 = vld [vmem:[#allocation7_spill] sm:$0xff]  ;;  %v3814_v23 = vld [vmem:[#allocation20_spill] sm:$0xff] }
 0x240   :  { %v1403_v5 = vperm.slane %v3812_v33, %v2940_v6  ;;  %v1922_v27 = vperm.slane %v3814_v23, %v2940_v6 }
 0x241   :  { %v2021_v1 = vunpack.c.l.bf16 %v2010_v39  ;;  %v2022_v9 = vunpack.c.h.bf16 %v2010_v39  ;;  %v1232_v37 = vpack.c.bf16 %v1166_v34, %v1166_v34  ;;  %v1775_v40 = vpack.c.bf16 %v1743_v60, %v1743_v60 }
 0x242   :  { %v1619_v60 = vunpack.c.l.bf16 %v1403_v5 }
 0x243   :  { %v2043_v44 = vsel %vm2031_vm1, %v2021_v1, 0.0  ;;  %v1584_v54 = vunpack.c.l.bf16 %v1232_v37  ;;  %v2045_v14 = vsel %vm2031_vm1, %v2022_v9, 0.0  ;;  %v1967_v51 = vunpack.c.l.bf16 %v1775_v40  ;;  %v1089_v58 = vpop.f32.mrf.mxu1 }
 0x244   :  { %v2044_v50 = vadd.f32 %v2043_v44, %v2042_v49  ;;  %v1984_v49 = vunpack.c.l.bf16 %v1904_v61 }
 0x245   :  { %v1648_v28 = vadd.f32 %v1616_v48, %v1584_v54  ;;  %v1999_v11 = vmul.f32 %v1983_v53, %v1967_v51  ;;  %v1986_v48 = vunpack.c.l.bf16 %v1922_v27 }
 0x246   :  { %v2046_v8 = vadd.f32 %v2045_v14, %v2044_v50  ;;  %v1168_v25 = vpop.f32.mrf.mxu2 }
 0x247   :  { %v1744_v21 = vmax.f32 %v1648_v28, 0.0  ;;  %v1169_v47 = vadd.f32 %v1168_v25, %v3645_v24 }
 0x249   :  { %v1776_v35 = vpack.c.bf16 %v1744_v21, %v1744_v21  ;;  %v1233_v12 = vpack.c.bf16 %v1169_v47, %v1169_v47 }
 0x24b   :  { %v1968_v17 = vunpack.c.l.bf16 %v1776_v35  ;;  %v1585_v62 = vunpack.c.l.bf16 %v1233_v12  ;;  %v1091_v18 = vpop.f32.mrf.mxu1 }
 0x24d   :  { %v2000_v42 = vmul.f32 %v1984_v49, %v1968_v17  ;;  %v1649_v29 = vadd.f32 %v1617_v52, %v1585_v62 }
 0x24e   :  { %v1170_v3 = vpop.f32.mrf.mxu2 }
 0x24f   :  { %v2011_v10 = vpack.c.bf16 %v2000_v42, %v1999_v11  ;;  %v1171_v63 = vadd.f32 %v1170_v3, %v3661_v4  ;;  %v1745_v59 = vmax.f32 %v1649_v29, 0.0  ;;  %v3813_v4 = vld [vmem:[#allocation19_spill] sm:$0xff] }
 0x250   :  { %v1913_v57 = vperm.slane %v3813_v4, %v2940_v6  ;;  %v3816_v11 = vld [vmem:[#allocation11_spill] sm:$0xff]  ;;  %v3819_v4 = vld [vmem:[#allocation9_spill] sm:$0xff] }
 0x251   :  { %v2023_v24 = vunpack.c.l.bf16 %v2011_v10  ;;  %v2024_v46 = vunpack.c.h.bf16 %v2011_v10  ;;  %v1234_v16 = vpack.c.bf16 %v1171_v63, %v1171_v63  ;;  %v1777_v30 = vpack.c.bf16 %v1745_v59, %v1745_v59  ;;  %v3818_v10 = vld [vmem:[#allocation23_spill] sm:$0xff] }
 0x252   :  { %v1985_v37 = vunpack.c.l.bf16 %v1913_v57  ;;  %v1421_v42 = vperm.slane %v3816_v11, %v2940_v6  ;;  %v1931_v63 = vperm.slane %v3818_v10, %v2940_v6  ;;  %v1430_v57 = vperm.slane %v3819_v4, %v2940_v6 }
 0x253   :  { %v2047_v15 = vsel %vm2031_vm1, %v2023_v24, 0.0  ;;  %v1586_v45 = vunpack.c.l.bf16 %v1234_v16  ;;  %v2049_v19 = vsel %vm2031_vm1, %v2024_v46, 0.0  ;;  %v1969_v34 = vunpack.c.l.bf16 %v1777_v30  ;;  %v1094_v59 = vpop.f32.mrf.mxu1 }
 0x254   :  { %v2048_v7 = vadd.f32 %v2047_v15, %v2046_v8  ;;  %v3815_v8 = vld [vmem:[#allocation8_spill] sm:$0xff] }
 0x255   :  { %v1650_v20 = vadd.f32 %v1618_v41, %v1586_v45  ;;  %v2001_v50 = vmul.f32 %v1985_v37, %v1969_v34  ;;  %v1412_v25 = vperm.slane %v3815_v8, %v2940_v6  ;;  %v1621_v45 = vunpack.c.l.bf16 %v1421_v42 }
 0x256   :  { %v2050_v0 = vadd.f32 %v2049_v19, %v2048_v7  ;;  %v1173_v32 = vpop.f32.mrf.mxu2  ;;  %v1987_v19 = vunpack.c.l.bf16 %v1931_v63 }
 0x257   :  { %v1746_v55 = vmax.f32 %v1650_v20, 0.0  ;;  %v1174_v39 = vadd.f32 %v1173_v32, %v1084_v56  ;;  %v1620_v35 = vunpack.c.l.bf16 %v1412_v25 }
 0x259   :  { %v1778_v1 = vpack.c.bf16 %v1746_v55, %v1746_v55  ;;  %v1235_v9 = vpack.c.bf16 %v1174_v39, %v1174_v39 }
 0x25b   :  { %v1970_v44 = vunpack.c.l.bf16 %v1778_v1  ;;  %v1587_v54 = vunpack.c.l.bf16 %v1235_v9  ;;  %v1096_v1 = vpop.f32.mrf.mxu1  ;;  %v1622_v9 = vunpack.c.l.bf16 %v1430_v57  ;;  %v3825_v57 = vld [vmem:[#allocation29_spill] sm:$0xff] }
 0x25d   :  { %v2002_v14 = vmul.f32 %v1986_v48, %v1970_v44  ;;  %v1651_v40 = vadd.f32 %v1619_v60, %v1587_v54 }
 0x25e   :  { %v1175_v28 = vpop.f32.mrf.mxu2 }
 0x25f   :  { %v2012_v61 = vpack.c.bf16 %v2002_v14, %v2001_v50  ;;  %v1176_v43 = vadd.f32 %v1175_v28, %v1086_v38  ;;  %v1747_v47 = vmax.f32 %v1651_v40, 0.0  ;;  %v3817_v38 = vld [vmem:[#allocation21_spill] sm:$0xff]  ;;  %v3820_v14 = vld [vmem:[#allocation10_spill] sm:$0xff] }
 0x260   :  { %v1940_v22 = vperm.slane %v3817_v38, %v2940_v6  ;;  %v1439_v40 = vperm.slane %v3820_v14, %v2940_v6  ;;  %v3823_v38 = vld [vmem:[#allocation14_spill] sm:$0xff] }
 0x261   :  { %v2025_v21 = vunpack.c.l.bf16 %v2012_v61  ;;  %v2026_v56 = vunpack.c.h.bf16 %v2012_v61  ;;  %v1236_v51 = vpack.c.bf16 %v1176_v43, %v1176_v43  ;;  %v1779_v17 = vpack.c.bf16 %v1747_v47, %v1747_v47  ;;  %v3822_v61 = vld [vmem:[#allocation22_spill] sm:$0xff] }
 0x262   :  { %v1988_v7 = vunpack.c.l.bf16 %v1940_v22  ;;  %v1949_v43 = vperm.slane %v3822_v61, %v2940_v6  ;;  %v1448_v22 = vperm.slane %v3823_v38, %v2940_v6  ;;  %v3829_v38 = vld [vmem:[#allocation17_spill] sm:$0xff] }
 0x263   :  { %v2051_v12 = vsel %vm2031_vm1, %v2025_v21, 0.0  ;;  %v1588_v52 = vunpack.c.l.bf16 %v1236_v51  ;;  %v2053_v53 = vsel %vm2031_vm1, %v2026_v56, 0.0  ;;  %v1971_v16 = vunpack.c.l.bf16 %v1779_v17 }
 0x264   :  { %v2052_v49 = vadd.f32 %v2051_v12, %v2050_v0  ;;  %v1623_v12 = vunpack.c.l.bf16 %v1439_v40 }
 0x265   :  { %v1652_v62 = vadd.f32 %v1620_v35, %v1588_v52  ;;  %v2003_v33 = vmul.f32 %v1987_v19, %v1971_v16 }
 0x266   :  { %v2054_v29 = vadd.f32 %v2053_v53, %v2052_v49  ;;  %v1178_v3 = vpop.f32.mrf.mxu2  ;;  %v1989_v49 = vunpack.c.l.bf16 %v1949_v43  ;;  %v3827_v43 = vld [vmem:[#allocation13_spill] sm:$0xff] }
 0x267   :  { %v1748_v24 = vmax.f32 %v1652_v62, 0.0  ;;  %v1179_v46 = vadd.f32 %v1178_v3, %v1089_v58  ;;  %v1099_v62 = vpop.f32.mrf.mxu1 }
 0x269   :  { %v1780_v41 = vpack.c.bf16 %v1748_v24, %v1748_v24  ;;  %v1237_v15 = vpack.c.bf16 %v1179_v46, %v1179_v46 }
 0x26b   :  { %v1972_v30 = vunpack.c.l.bf16 %v1780_v41  ;;  %v1589_v20 = vunpack.c.l.bf16 %v1237_v15  ;;  %v1624_v41 = vunpack.c.l.bf16 %v1448_v22  ;;  %v1475_v22 = vperm.slane %v3829_v38, %v2940_v6 }
 0x26d   :  { %v2004_v5 = vmul.f32 %v1988_v7, %v1972_v30  ;;  %v1653_v0 = vadd.f32 %v1621_v45, %v1589_v20 }
 0x26e   :  { %v1180_v32 = vpop.f32.mrf.mxu2 }
 0x26f   :  { %v2013_v23 = vpack.c.bf16 %v2004_v5, %v2003_v33  ;;  %v1181_v27 = vadd.f32 %v1180_v32, %v1091_v18  ;;  %v1749_v39 = vmax.f32 %v1653_v0, 0.0  ;;  %v3821_v18 = vld [vmem:[#allocation26_spill] sm:$0xff]  ;;  %v3824_v33 = vld [vmem:[#allocation12_spill] sm:$0xff]  ;;  %v1101_v32 = vpop.f32.mrf.mxu1 }
 0x270   :  { %v1958_v25 = vperm.slane %v3821_v18, %v2940_v6  ;;  %v1457_v5 = vperm.slane %v3824_v33, %v2940_v6 }
 0x271   :  { %v2027_v55 = vunpack.c.l.bf16 %v2013_v23  ;;  %v2028_v58 = vunpack.c.h.bf16 %v2013_v23  ;;  %v1238_v34 = vpack.c.bf16 %v1181_v27, %v1181_v27  ;;  %v1781_v54 = vpack.c.bf16 %v1749_v39, %v1749_v39  ;;  %v3826_v27 = vld [vmem:[#allocation25_spill] sm:$0xff] }
 0x272   :  { %v1990_v52 = vunpack.c.l.bf16 %v1958_v25  ;;  %v2110_v23 = vperm.slane %v3825_v57, %v2940_v6 }
 0x273   :  { %v2055_v60 = vsel %vm2031_vm1, %v2027_v55, 0.0  ;;  %v1590_v37 = vunpack.c.l.bf16 %v1238_v34  ;;  %v2057_v44 = vsel %vm2031_vm1, %v2028_v58, 0.0  ;;  %v1973_v47 = vunpack.c.l.bf16 %v1781_v54 }
 0x274   :  { %v2056_v48 = vadd.f32 %v2055_v60, %v2054_v29  ;;  %v2101_v55 = vperm.slane %v3826_v27, %v2940_v6 }
 0x275   :  { %v1654_v50 = vadd.f32 %v1622_v9, %v1590_v37  ;;  %v2005_v11 = vmul.f32 %v1989_v49, %v1973_v47  ;;  %v1625_v37 = vunpack.c.l.bf16 %v1457_v5  ;;  %v3828_v49 = vld [vmem:[#allocation24_spill] sm:$0xff] }
 0x276   :  { %v2058_v28 = vadd.f32 %v2057_v44, %v2056_v48  ;;  %v1183_v8 = vpop.f32.mrf.mxu2  ;;  %v2254_v44 = vunpack.c.l.bf16 %v2110_v23  ;;  %v2253_v54 = vunpack.c.l.bf16 %v2101_v55  ;;  %v3832_v55 = vld [vmem:[#allocation15_spill] sm:$0xff] }
 0x277   :  { %v1750_v21 = vmax.f32 %v1654_v50, 0.0  ;;  %v1184_v56 = vadd.f32 %v1183_v8, %v1094_v59 }
 0x279   :  { %v1782_v51 = vpack.c.bf16 %v1750_v21, %v1750_v21  ;;  %v1239_v35 = vpack.c.bf16 %v1184_v56, %v1184_v56  ;;  %v1466_v21 = vperm.slane %v3827_v43, %v2940_v6 }
 0x27b   :  { %v1974_v53 = vunpack.c.l.bf16 %v1782_v51  ;;  %v1591_v17 = vunpack.c.l.bf16 %v1239_v35  ;;  %v1104_v51 = vpop.f32.mrf.mxu1 }
 0x27d   :  { %v2006_v42 = vmul.f32 %v1990_v52, %v1974_v53  ;;  %v1655_v29 = vadd.f32 %v1623_v12, %v1591_v17  ;;  %v2075_v53 = vperm.slane %v3828_v49, 0 }
 0x27e   :  { %v1185_v3 = vpop.f32.mrf.mxu2 }
 0x27f   :  { %v2014_v10 = vpack.c.bf16 %v2006_v42, %v2005_v11  ;;  %v1186_v63 = vadd.f32 %v1185_v3, %v1096_v1  ;;  %v1751_v59 = vmax.f32 %v1655_v29, 0.0 }
 0x281   :  { %v2029_v24 = vunpack.c.l.bf16 %v2014_v10  ;;  %v2030_v46 = vunpack.c.h.bf16 %v2014_v10  ;;  %v1240_v16 = vpack.c.bf16 %v1186_v63, %v1186_v63  ;;  %v1783_v30 = vpack.c.bf16 %v1751_v59, %v1751_v59  ;;  %v3830_v10 = vld [vmem:[#allocation27_spill] sm:$0xff] }
 0x282   :  { %v2119_v63 = vperm.slane %v3830_v10, %v2940_v6 }
 0x283   :  { %v2059_v15 = vsel %vm2031_vm1, %v2029_v24, 0.0  ;;  %v1592_v45 = vunpack.c.l.bf16 %v1240_v16  ;;  %v2061_v19 = vsel %vm2031_vm1, %v2030_v46, 0.0  ;;  %v2237_v1 = vunpack.c.l.bf16 %v1783_v30  ;;  %v3831_v24 = vld [vmem:[#allocation28_spill] sm:$0xff]  ;;  %v1106_v33 = vpop.f32.mrf.mxu1 }
 0x284   :  { %v2060_v7 = vadd.f32 %v2059_v15, %v2058_v28  ;;  %v2128_v46 = vperm.slane %v3831_v24, %v2940_v6  ;;  %v2255_v30 = vunpack.c.l.bf16 %v2119_v63 }
 0x285   :  { %v1656_v20 = vadd.f32 %v1624_v41, %v1592_v45  ;;  %v2269_v28 = vmul.f32 %v2253_v54, %v2237_v1 }
 0x286   :  { %v2062_v0 = vadd.f32 %v2061_v19, %v2060_v7  ;;  %v1188_v4 = vpop.f32.mrf.mxu2  ;;  %v1627_v19 = vunpack.c.l.bf16 %v1475_v22 }
 0x287   :  { %v1752_v58 = vmax.f32 %v1656_v20, 0.0  ;;  %v1189_v39 = vadd.f32 %v1188_v4, %v1099_v62  ;;  %v1626_v62 = vunpack.c.l.bf16 %v1466_v21  ;;  %v2256_v20 = vunpack.c.l.bf16 %v2128_v46  ;;  %v3833_v21 = vld [vmem:[#allocation16_spill] sm:$0xff] }
 0x288   :  { %v2063_v34 = vrot.slane %v2062_v0, 4 }
 0x289   :  { %v1784_v9 = vpack.c.bf16 %v1752_v58, %v1752_v58  ;;  %v1241_v60 = vpack.c.bf16 %v1189_v39, %v1189_v39  ;;  %v1484_v58 = vperm.slane %v3832_v55, %v2940_v6 }
 0x28a   :  { %v2064_v48 = vadd.f32 %v2063_v34, %v2062_v0 }
 0x28b   :  { %v2238_v50 = vunpack.c.l.bf16 %v1784_v9  ;;  %v1593_v14 = vunpack.c.l.bf16 %v1241_v60 }
 0x28c   :  { %v2065_v40 = vrot.slane %v2064_v48, 2 }
 0x28d   :  { %v2270_v8 = vmul.f32 %v2254_v44, %v2238_v50  ;;  %v1657_v18 = vadd.f32 %v1625_v37, %v1593_v14  ;;  %v1628_v14 = vunpack.c.l.bf16 %v1484_v58 }
 0x28e   :  { %v1190_v25 = vpop.f32.mrf.mxu2  ;;  %v2066_v61 = vadd.f32 %v2065_v40, %v2064_v48 }
 0x28f   :  { %v2285_v56 = vpack.c.bf16 %v2270_v8, %v2269_v28  ;;  %v1191_v47 = vadd.f32 %v1190_v25, %v1101_v32  ;;  %v1753_v12 = vmax.f32 %v1657_v18, 0.0  ;;  %v1109_v18 = vpop.f32.mrf.mxu1 }
 0x290   :  { %v2067_v35 = vrot.slane %v2066_v61, 1 }
 0x291   :  { %v1242_v52 = vpack.c.bf16 %v1191_v47, %v1191_v47  ;;  %v1785_v29 = vpack.c.bf16 %v1753_v12, %v1753_v12  ;;  %v2293_v5 = vunpack.c.l.bf16 %v2285_v56  ;;  %v2294_v0 = vunpack.c.h.bf16 %v2285_v56 }
 0x292   :  { %v2068_v17 = vadd.f32 %v2067_v35, %v2066_v61  ;;  %v1493_v56 = vperm.slane %v3833_v21, %v2940_v6  ;;  %v3834_v35 = vld [vmem:[#allocation30_spill] sm:$0xff] }
 0x293   :  { %v1594_v11 = vunpack.c.l.bf16 %v1242_v52  ;;  %v2239_v15 = vunpack.c.l.bf16 %v1785_v29  ;;  %v2309_v34 = vsel %vm2031_vm1, %v2293_v5, 0.0  ;;  %v2310_v1 = vsel %vm2031_vm1, %v2294_v0, 0.0  ;;  %v3835_v52 = vld [vmem:[#allocation32_spill] sm:$0xff] }
 0x294   :  { %v3726_v42 = vadd.f32 %v2075_v53, %v2068_v17  ;;  %v2311_v50 = vadd.f32 %v2310_v1, %v2309_v34  ;;  %v2146_v12 = vperm.slane %v3834_v35, %v2940_v6  ;;  %v2137_v49 = vperm.slane %v3835_v52, %v2940_v6  ;;  %v3837_v34 = vld [vmem:[#allocation31_spill] sm:$0xff] }
 0x295   :  { %v1658_v3 = vadd.f32 %v1626_v62, %v1594_v11  ;;  %v2271_v57 = vmul.f32 %v2255_v30, %v2239_v15  ;;  %v3836_v15 = vld [vmem:[#allocation18_spill] sm:$0xff]  ;;  %v2155_v1 = vperm.slane %v3837_v34, %v2940_v6  ;;  %v2304_v35 = vunpack.c.h.bf16 %v3627_v36 }
 0x296   :  { %v1193_v59 = vpop.f32.mrf.mxu2  ;;  %v2258_v38 = vunpack.c.l.bf16 %v2146_v12  ;;  %v2257_v22 = vunpack.c.l.bf16 %v2137_v49  ;;  %v2305_v49 = vunpack.c.l.bf16 %v3653_v31 }
 0x297   :  { %v1754_v16 = vmax.f32 %v1658_v3, 0.0  ;;  %v1194_v41 = vadd.f32 %v1193_v59, %v1104_v51  ;;  %v1629_v3 = vunpack.c.l.bf16 %v1493_v56  ;;  %v2303_v56 = vunpack.c.l.bf16 %v3627_v36 }
 0x298   :  { %v2308_v36 = vunpack.c.h.bf16 %v3671_v13 }
 0x299   :  { %v1786_v45 = vpack.c.bf16 %v1754_v16, %v1754_v16  ;;  %v1243_v7 = vpack.c.bf16 %v1194_v41, %v1194_v41  ;;  %v1111_v16 = vpop.f32.mrf.mxu1  ;;  %v2328_v52 = vsel %vm2031_vm1, %v2303_v56, 0.0 }
 0x29b   :  { %v2240_v32 = vunpack.c.l.bf16 %v1786_v45  ;;  %v1595_v4 = vunpack.c.l.bf16 %v1243_v7  ;;  %v1502_v45 = vperm.slane %v3836_v15, %v2940_v6  ;;  %v2350_v15 = vpop.permute.xlu1 %2349 }
 0x29d   :  { %v2272_v23 = vmul.f32 %v2256_v20, %v2240_v32  ;;  %v1659_v27 = vadd.f32 %v1627_v19, %v1595_v4  ;;  %v1630_v0 = vunpack.c.l.bf16 %v1502_v45 }
 0x29e   :  { %v1195_v39 = vpop.f32.mrf.mxu2 }
 0x29f   :  { %v2286_v9 = vpack.c.bf16 %v2272_v23, %v2271_v57  ;;  %v1196_v60 = vadd.f32 %v1195_v39, %v1106_v33  ;;  %v1755_v44 = vmax.f32 %v1659_v27, 0.0  ;;  %v2164_v39 = vperm.slane %v3577_v26, %v2940_v6 }
 0x2a0   :  { %v2302_v26 = vunpack.c.h.bf16 %v3589_v2 }
 0x2a1   :  { %v2295_v37 = vunpack.c.l.bf16 %v2286_v9  ;;  %v2296_v48 = vunpack.c.h.bf16 %v2286_v9  ;;  %v1244_v54 = vpack.c.bf16 %v1196_v60, %v1196_v60  ;;  %v1787_v61 = vpack.c.bf16 %v1755_v44, %v1755_v44 }
 0x2a2   :  { %v2259_v44 = vunpack.c.l.bf16 %v2155_v1 }
 0x2a3   :  { %v2312_v40 = vsel %vm2031_vm1, %v2295_v37, 0.0  ;;  %v1596_v28 = vunpack.c.l.bf16 %v1244_v54  ;;  %v2314_v25 = vsel %vm2031_vm1, %v2296_v48, 0.0  ;;  %v2241_v62 = vunpack.c.l.bf16 %v1787_v61 }
 0x2a4   :  { %v2313_v8 = vadd.f32 %v2312_v40, %v2311_v50  ;;  %v2260_v48 = vunpack.c.l.bf16 %v2164_v39 }
 0x2a5   :  { %v1660_v43 = vadd.f32 %v1628_v14, %v1596_v28  ;;  %v2273_v24 = vmul.f32 %v2257_v22, %v2241_v62 }
 0x2a6   :  { %v2315_v47 = vadd.f32 %v2314_v25, %v2313_v8  ;;  %v1198_v51 = vpop.f32.mrf.mxu2 }
 0x2a7   :  { %v1756_v53 = vmax.f32 %v1660_v43, 0.0  ;;  %v1199_v17 = vadd.f32 %v1198_v51, %v1109_v18  ;;  %v2301_v18 = vunpack.c.l.bf16 %v3589_v2  ;;  %v2326_v51 = vsel %vm2031_vm1, %v2302_v26, 0.0 }
 0x2a8   :  { %v2330_v2 = vsel %vm2031_vm1, %v2304_v35, 0.0 }
 0x2a9   :  { %v1788_v11 = vpack.c.bf16 %v1756_v53, %v1756_v53  ;;  %v1245_v29 = vpack.c.bf16 %v1199_v17, %v1199_v17  ;;  %v2324_v21 = vsel %vm2031_vm1, %v2301_v18, 0.0  ;;  %v2306_v17 = vunpack.c.h.bf16 %v3653_v31 }
 0x2ab   :  { %v2242_v10 = vunpack.c.l.bf16 %v1788_v11  ;;  %v1597_v63 = vunpack.c.l.bf16 %v1245_v29  ;;  %v2332_v11 = vsel %vm2031_vm1, %v2305_v49, 0.0  ;;  %v2307_v29 = vunpack.c.l.bf16 %v3671_v13 }
 0x2ad   :  { %v2274_v46 = vmul.f32 %v2258_v38, %v2242_v10  ;;  %v1661_v59 = vadd.f32 %v1629_v3, %v1597_v63  ;;  %v2334_v38 = vsel %vm2031_vm1, %v2306_v17, 0.0  ;;  %v2336_v10 = vsel %vm2031_vm1, %v2307_v29, 0.0 }
 0x2ae   :  { %v1200_v41 = vpop.f32.mrf.mxu2 }
 0x2af   :  { %v2287_v7 = vpack.c.bf16 %v2274_v46, %v2273_v24  ;;  %v1201_v19 = vadd.f32 %v1200_v41, %v1111_v16  ;;  %v1757_v33 = vmax.f32 %v1661_v59, 0.0  ;;  %v2338_v24 = vsel %vm2031_vm1, %v2308_v36, 0.0 }
 0x2b1   :  { %v2297_v30 = vunpack.c.l.bf16 %v2287_v7  ;;  %v2298_v20 = vunpack.c.h.bf16 %v2287_v7  ;;  %v1246_v5 = vpack.c.bf16 %v1201_v19, %v1201_v19  ;;  %v1789_v27 = vpack.c.bf16 %v1757_v33, %v1757_v33 }
 0x2b2   :  { %v2352_v7 = vperm.slane %v2350_v15, 0 }
 0x2b3   :  { %v2316_v32 = vsel %vm2031_vm1, %v2297_v30, 0.0  ;;  %v1598_v4 = vunpack.c.l.bf16 %v1246_v5  ;;  %v2318_v23 = vsel %vm2031_vm1, %v2298_v20, 0.0  ;;  %v2243_v60 = vunpack.c.l.bf16 %v1789_v27 }
 0x2b4   :  { %v2317_v57 = vadd.f32 %v2316_v32, %v2315_v47 }
 0x2b5   :  { %v1662_v55 = vadd.f32 %v1630_v0, %v1598_v4  ;;  %v2275_v50 = vmul.f32 %v2259_v44, %v2243_v60 }
 0x2b6   :  { %v2319_v58 = vadd.f32 %v2318_v23, %v2317_v57 }
 0x2b7   :  { %v1758_v9 = vmax.f32 %v1662_v55, 0.0 }
 0x2b9   :  { %v1790_v37 = vpack.c.bf16 %v1758_v9, %v1758_v9 }
 0x2bb   :  { %v2244_v54 = vunpack.c.l.bf16 %v1790_v37 }
 0x2bd   :  { %v2276_v14 = vmul.f32 %v2260_v48, %v2244_v54 }
 0x2bf   :  { %v2288_v40 = vpack.c.bf16 %v2276_v14, %v2275_v50 }
 0x2c1   :  { %v2299_v28 = vunpack.c.l.bf16 %v2288_v40  ;;  %v2300_v8 = vunpack.c.h.bf16 %v2288_v40 }
 0x2c3   :  { %v2320_v25 = vsel %vm2031_vm1, %v2299_v28, 0.0  ;;  %v2322_v6 = vsel %vm2031_vm1, %v2300_v8, 0.0 }
 0x2c4   :  { %v2321_v61 = vadd.f32 %v2320_v25, %v2319_v58 }
 0x2c6   :  { %v2323_v43 = vadd.f32 %v2322_v6, %v2321_v61 }
 0x2c8   :  { %v2325_v47 = vadd.f32 %v2324_v21, %v2323_v43 }
 0x2ca   :  { %v2327_v12 = vadd.f32 %v2326_v51, %v2325_v47 }
 0x2cc   :  { %v2329_v53 = vadd.f32 %v2328_v52, %v2327_v12 }
 0x2ce   :  { %v2331_v62 = vadd.f32 %v2330_v2, %v2329_v53 }
 0x2d0   :  { %v2333_v3 = vadd.f32 %v2332_v11, %v2331_v62 }
 0x2d2   :  { %v2335_v22 = vadd.f32 %v2334_v38, %v2333_v3 }
 0x2d4   :  { %v2337_v63 = vadd.f32 %v2336_v10, %v2335_v22 }
 0x2d6   :  { %v2339_v46 = vadd.f32 %v2338_v24, %v2337_v63 }
 0x2d8   :  { %v2340_v59 = vrot.slane %v2339_v46, 4 }
 0x2da   :  { %v2341_v16 = vadd.f32 %v2340_v59, %v2339_v46 }
 0x2dc   :  { %v2342_v31 = vrot.slane %v2341_v16, 2 }
 0x2de   :  { %v2343_v41 = vadd.f32 %v2342_v31, %v2341_v16 }
 0x2e0   :  { %v2344_v45 = vrot.slane %v2343_v41, 1 }
 0x2e2   :  { %v2345_v19 = vadd.f32 %v2344_v45, %v2343_v41 }
 0x2e4   :  { %v2353_v30 = vadd.f32 %v2352_v7, %v2345_v19 }
 0x2e6   :  { %v2355_v13 = vadd.f32 %v2353_v30, %v3726_v42 }
 0x2e8   :  { %v2356_v20 = vsub.f32 %v2355_v13, %v2353_v30 }
 0x2ea   :  { %2358 = vst.msk [vmem:[#allocation4] sm:$0x1] %vm2357_vm2, %v2356_v20 }
 0x2eb   :  { %2369 = dma.vmem_to_hbm [thread:$0]  %s2365_s8, 16, %s2367_s21, [#allocation5]  }
 0x2ec   :  { %2678 = dma.done.wait [#allocation5], 16  }
 0x2ed   :  { %2679 = vsyncadd [#allocation5], 4294967280 }
 0x2ee   :  { %2374 = vsyncpa [#allocation5], 1 }

</bundles_post_ra>
